<compile_context>
chip_gen: v6e
topology: v6e:2x2x1
jax: 0.10.0
libtpu: 0.0.40
codegen_flags: <defaults>
</compile_context>

<pallas_src>
import functools

import jax
import jax.numpy as jnp
import numpy as np
from jax import lax
from jax.experimental import pallas as pl
from jax.experimental.pallas import tpu as pltpu

CFG = (8, 8, 'M', 16, 16, 'M')   # conv3x3+ReLU widths, 'M' = maxpool 2x2 stride 2
IN_CHANNELS = 3
LANE = 128                       # channel axis padded to a multiple of the 128-lane vreg width
VMEM_LIMIT = 32 * 1024 * 1024


def _round_up(n, m):
    return ((n + m - 1) // m) * m


def _pick_row_chunk(h, w, cout, fuse_pool, acc_budget_bytes=64 * 1024):
    # Output rows produced per inner step.  Pick the largest rc whose f32 accumulator
    # (rc*W*Cout*4B) stays within ~16 vregs of live values (no spills), preferring a
    # larger M = rc*W for MXU occupancy.  Maxpool fusion needs an even rc.
    cands = [rc for rc in (8, 4, 2, 1)
             if h % rc == 0 and not (fuse_pool and rc % 2)]
    if not cands:
        raise ValueError(f"maxpool 2x2 needs an even spatial size, got H={h}")
    for rc in cands:
        if rc * w * cout * 4 <= acc_budget_bytes:
            return rc
    return cands[-1]


# ----------------------- conv3x3 + bias + ReLU (+ fused maxpool 2x2) -----------------------
def _conv3x3_kernel(x_ref, w_ref, b_ref, o_ref, xp_ref, vbuf_ref, *, rc, fuse_pool):
    # x_ref   : (1, H, W, Cin)  one image, channels lane-padded
    # w_ref   : (3, 3, Cin, Cout) HWIO weights
    # b_ref   : (1, Cout)
    # o_ref   : (1, H, W, Cout) or (1, H//2, W//2, Cout) when fuse_pool
    # xp_ref  : (H+2, W+2, Cin) VMEM scratch holding the zero-padded (SAME) input
    # vbuf_ref: (rc//2, W, Cout) VMEM scratch for the fused 2x2 maxpool
    H, W, Cin = x_ref.shape[1], x_ref.shape[2], x_ref.shape[3]
    Cout = o_ref.shape[3]

    # ---- build the 1px zero halo in VMEM: one memset-like fill + one bulk interior copy ----
    xp_ref[...] = jnp.zeros(xp_ref.shape, xp_ref.dtype)
    xp_ref[pl.ds(1, H), pl.ds(1, W), :] = x_ref[0]

    bias = b_ref[...]                           # (1, Cout), broadcasts over M
    n_chunks = H // rc

    def _chunk(c, carry):
        row0 = c * rc
        # ---- 9 large-M MXU dots: (rc*W, Cin) x (Cin, Cout), f32 accumulation ----
        acc = jnp.zeros((rc * W, Cout), jnp.float32)
        for dy in range(3):
            for dx in range(3):
                win = xp_ref[pl.ds(row0 + dy, rc), pl.ds(dx, W), :]       # (rc, W, Cin)
                acc = acc + jnp.dot(win.reshape(rc * W, Cin), w_ref[dy, dx],
                                    preferred_element_type=jnp.float32)
        y = jnp.maximum(acc + bias, 0.0).reshape(rc, W, Cout)             # bias + ReLU

        if fuse_pool:
            # Fused 2x2/2 maxpool: vertical max into scratch, horizontal max via
            # stride-2 sublane reads, one lane-dense store per chunk.
            for i in range(rc // 2):
                vbuf_ref[i] = jnp.maximum(y[2 * i], y[2 * i + 1])
            left = vbuf_ref[:, pl.ds(0, W // 2, stride=2), :]
            right = vbuf_ref[:, pl.ds(1, W // 2, stride=2), :]
            o_ref[0, pl.ds(c * (rc // 2), rc // 2)] = (
                jnp.maximum(left, right).astype(o_ref.dtype))
        else:
            o_ref[0, pl.ds(row0, rc)] = y.astype(o_ref.dtype)
        return carry

    lax.fori_loop(0, n_chunks, _chunk, 0)


def conv3x3_relu_pool(x, w, b, *, fuse_pool):
    # x: (N, H, W, Cin) f32 (Cin multiple of 128); w: (3, 3, Cin, Cout); b: (1, Cout)
    N, H, W, Cin = x.shape
    Cout = w.shape[-1]
    if fuse_pool:
        assert H % 2 == 0 and W % 2 == 0, "maxpool 2x2 needs even spatial dims"
        Hout, Wout = H // 2, W // 2
    else:
        Hout, Wout = H, W
    rc = _pick_row_chunk(H, W, Cout, fuse_pool)

    kernel = functools.partial(_conv3x3_kernel, rc=rc, fuse_pool=fuse_pool)
    return pl.pallas_call(
        kernel,
        out_shape=jax.ShapeDtypeStruct((N, Hout, Wout, Cout), x.dtype),
        grid=(N,),
        in_specs=[
            pl.BlockSpec((1, H, W, Cin), lambda n: (n, 0, 0, 0)),
            pl.BlockSpec((3, 3, Cin, Cout), lambda n: (0, 0, 0, 0)),
            pl.BlockSpec((1, Cout), lambda n: (0, 0)),
        ],
        out_specs=pl.BlockSpec((1, Hout, Wout, Cout), lambda n: (n, 0, 0, 0)),
        scratch_shapes=[
            pltpu.VMEM((H + 2, W + 2, Cin), jnp.float32),
            pltpu.VMEM((max(rc // 2, 1), W, Cout), jnp.float32),
        ],
        compiler_params=pltpu.CompilerParams(
            dimension_semantics=("parallel",),
            vmem_limit_bytes=VMEM_LIMIT),
    )(x, w, b)


# ----------------------------------- AdaptiveAvgPool2d((7,7)) ------------------------------
def _adaptive_pool7_kernel(x_ref, pw_ref, o_ref, *, h_bins):
    # x_ref: (1, S_h, S_w, C); pw_ref: (7, S_w) column-averaging matrix; o_ref: (1, 7, 7, C)
    for oi, (h0, h1) in enumerate(h_bins):
        v = x_ref[0, h0].astype(jnp.float32)
        for h in range(h0 + 1, h1):
            v = v + x_ref[0, h]
        v = v * (1.0 / float(h1 - h0))                       # (S_w, C) row-bin average
        o_ref[0, oi] = jnp.dot(pw_ref[...], v,               # (7, S_w) @ (S_w, C) on the MXU
                               preferred_element_type=jnp.float32).astype(o_ref.dtype)


def adaptive_avgpool_7x7(x):
    # PyTorch adaptive bins: [floor(i*S/7), ceil((i+1)*S/7))
    N, S_h, S_w, C = x.shape
    h_bins = tuple(((i * S_h) // 7, -(-((i + 1) * S_h) // 7)) for i in range(7))
    w_bins = [((j * S_w) // 7, -(-((j + 1) * S_w) // 7)) for j in range(7)]
    pw = np.zeros((7, S_w), np.float32)
    for j, (w0, w1) in enumerate(w_bins):
        pw[j, w0:w1] = 1.0 / float(w1 - w0)
    pw = jnp.asarray(pw)

    kernel = functools.partial(_adaptive_pool7_kernel, h_bins=h_bins)
    return pl.pallas_call(
        kernel,
        out_shape=jax.ShapeDtypeStruct((N, 7, 7, C), x.dtype),
        grid=(N,),
        in_specs=[
            pl.BlockSpec((1, S_h, S_w, C), lambda n: (n, 0, 0, 0)),
            pl.BlockSpec((7, S_w), lambda n: (0, 0)),
        ],
        out_specs=pl.BlockSpec((1, 7, 7, C), lambda n: (n, 0, 0, 0)),
        compiler_params=pltpu.CompilerParams(
            dimension_semantics=("parallel",),
            vmem_limit_bytes=VMEM_LIMIT),
    )(x, pw)


# ------------------------------------ parameters & forward ---------------------------------
def init_params(key, cfg=CFG, in_channels=IN_CHANNELS):
    # Matches _initialize_weights: kaiming_normal_(mode='fan_out', relu), bias = 0.
    params = []
    cin = in_channels
    for v in cfg:
        if v == 'M':
            continue
        cout = v
        key, sub = jax.random.split(key)
        std = float(np.sqrt(2.0 / (cout * 3 * 3)))                          # fan_out = Cout*kh*kw
        w = jax.random.normal(sub, (3, 3, cin, cout), jnp.float32) * std    # HWIO
        b = jnp.zeros((cout,), jnp.float32)
        params.append((w, b))
        cin = cout
    return params


def _pad_params_to_lane(params):
    # Zero-pad Cin/Cout to multiples of 128 so every kernel sees lane-dense channels.
    padded = []
    for w, b in params:
        kh, kw, cin, cout = w.shape
        cinp, coutp = _round_up(cin, LANE), _round_up(cout, LANE)
        wp = jnp.zeros((kh, kw, cinp, coutp), jnp.float32).at[:, :, :cin, :cout].set(w)
        bp = jnp.zeros((1, coutp), jnp.float32).at[0, :cout].set(b)
        padded.append((wp, bp))
    return padded


def vgg_extractor_forward(x_nchw, params, cfg=CFG):
    # forward(x) = features(x) -> AdaptiveAvgPool2d((7,7)) -> view(N, -1)
    conv_widths = [v for v in cfg if v != 'M']
    x = jnp.transpose(x_nchw, (0, 2, 3, 1)).astype(jnp.float32)     # NCHW -> NHWC (glue)
    cin0 = x.shape[-1]
    x = jnp.pad(x, ((0, 0), (0, 0), (0, 0), (0, _round_up(cin0, LANE) - cin0)))
    padded_params = _pad_params_to_lane(params)

    pi, i = 0, 0
    while i < len(cfg):
        if cfg[i] == 'M':
            # TODO(synk): standalone maxpool (an 'M' not preceded by a conv) is not implemented;
            # in every standard VGG cfg the pool is fused into the previous conv kernel.
            raise NotImplementedError("cfg 'M' must follow a conv layer")
        w, b = padded_params[pi]
        pi += 1
        fuse = (i + 1 < len(cfg)) and (cfg[i + 1] == 'M')
        x = conv3x3_relu_pool(x, w, b, fuse_pool=fuse)
        i += 2 if fuse else 1

    x = adaptive_avgpool_7x7(x)
    x = x[..., :conv_widths[-1]]                                    # drop lane padding
    x = jnp.transpose(x, (0, 3, 1, 2))                              # NHWC -> NCHW (glue)
    return x.reshape(x.shape[0], -1)                                # channel-major flatten


# ------------------------------------ pure-JAX reference -----------------------------------
def reference_forward(x_nchw, params, cfg=CFG):
    x = jnp.transpose(x_nchw, (0, 2, 3, 1)).astype(jnp.float32)
    pi = 0
    for v in cfg:
        if v == 'M':
            N, H, W, C = x.shape
            x = x.reshape(N, H // 2, 2, W // 2, 2, C).max(axis=(2, 4))
        else:
            w, b = params[pi]
            pi += 1
            x = lax.conv_general_dilated(x, w, (1, 1), 'SAME',
                                         dimension_numbers=('NHWC', 'HWIO', 'NHWC'))
            x = jnp.maximum(x + b.reshape(1, 1, 1, -1), 0.0)
    N, H, W, C = x.shape
    rows = []
    for oi in range(7):
        h0, h1 = (oi * H) // 7, -(-((oi + 1) * H) // 7)
        cols = []
        for oj in range(7):
            w0, w1 = (oj * W) // 7, -(-((oj + 1) * W) // 7)
            cols.append(jnp.mean(x[:, h0:h1, w0:w1, :], axis=(1, 2)))
        rows.append(jnp.stack(cols, axis=1))
    x = jnp.stack(rows, axis=1)                 # (N, 7, 7, C)
    x = jnp.transpose(x, (0, 3, 1, 2))
    return x.reshape(x.shape[0], -1)


if __name__ == "__main__":
    key = jax.random.PRNGKey(0)
    kx, kp = jax.random.split(key)
    x = jax.random.normal(kx, (2, IN_CHANNELS, 32, 32), jnp.float32)   # NCHW like PyTorch
    params = init_params(kp)

    out = jax.block_until_ready(vgg_extractor_forward(x, params))
    ref = jax.block_until_ready(reference_forward(x, params))

    last_c = [v for v in CFG if v != 'M'][-1]
    assert out.shape == (2, last_c * 7 * 7), out.shape
    if not np.allclose(np.asarray(out), np.asarray(ref), rtol=1e-3, atol=1e-3):
        max_err = float(np.max(np.abs(np.asarray(out) - np.asarray(ref))))
        raise AssertionError(f"mismatch vs reference, max abs err = {max_err}")
    print("KERNEL_OK")
</pallas_src>

<mosaic_0001>
module attributes {stable_mosaic.version = 11 : i64} {
  func.func @_conv3x3_kernel(%arg0: i32, %arg1: memref<1x32x32x128xf32, #tpu.memory_space<vmem>>, %arg2: memref<3x3x128x128xf32, #tpu.memory_space<vmem>>, %arg3: memref<1x128xf32, #tpu.memory_space<vmem>>, %arg4: memref<1x32x32x128xf32, #tpu.memory_space<vmem>>, %arg5: memref<34x34x128xf32, #tpu.memory_space<vmem>>, %arg6: memref<2x32x128xf32, #tpu.memory_space<vmem>>) attributes {dimension_semantics = [#tpu.dimension_semantics<parallel>], iteration_bounds = array<i64: 2>, scalar_prefetch = 0 : i64, scratch_operands = 2 : i64, tpu.core_type = #tpu.core_type<tc>, window_params = [{transform_indices = @transform_0, window_bounds = array<i64: 1, 32, 32, 128>}, {pipeline_mode = #tpu.pipeline_mode<synchronous>, transform_indices = @transform_1, window_bounds = array<i64: 3, 3, 128, 128>}, {pipeline_mode = #tpu.pipeline_mode<synchronous>, transform_indices = @transform_2, window_bounds = array<i64: 1, 128>}, {transform_indices = @transform_3, window_bounds = array<i64: 1, 32, 32, 128>}]} {
    %cst = arith.constant 0.000000e+00 : f32
    %0 = vector.broadcast %cst : f32 to vector<34x34x128xf32>
    %c0 = arith.constant 0 : index
    %c0_0 = arith.constant 0 : index
    %c0_1 = arith.constant 0 : index
    %1 = vector.load %arg5[%c0, %c0_0, %c0_1] : memref<34x34x128xf32, #tpu.memory_space<vmem>>, vector<34x34x128xf32>
    tpu.vector_store %arg5[%c0, %c0_0, %c0_1], %0 {strides = array<i32>} : memref<34x34x128xf32, #tpu.memory_space<vmem>>, vector<34x34x128xf32>,
    %c0_2 = arith.constant 0 : index
    %c0_3 = arith.constant 0 : index
    %c0_4 = arith.constant 0 : index
    %c0_5 = arith.constant 0 : index
    %2 = vector.load %arg1[%c0_2, %c0_3, %c0_4, %c0_5] : memref<1x32x32x128xf32, #tpu.memory_space<vmem>>, vector<1x32x32x128xf32>
    %3 = vector.shape_cast %2 : vector<1x32x32x128xf32> to vector<32x32x128xf32>
    %c1 = arith.constant 1 : index
    %c1_6 = arith.constant 1 : index
    %c0_7 = arith.constant 0 : index
    %4 = vector.load %arg5[%c1, %c1_6, %c0_7] : memref<34x34x128xf32, #tpu.memory_space<vmem>>, vector<32x32x128xf32>
    tpu.vector_store %arg5[%c1, %c1_6, %c0_7], %3 {strides = array<i32>} : memref<34x34x128xf32, #tpu.memory_space<vmem>>, vector<32x32x128xf32>,
    %c0_8 = arith.constant 0 : index
    %c0_9 = arith.constant 0 : index
    %5 = vector.load %arg3[%c0_8, %c0_9] : memref<1x128xf32, #tpu.memory_space<vmem>>, vector<1x128xf32>
    %c0_i32 = arith.constant 0 : i32
    %c8_i32 = arith.constant 8 : i32
    %6 = arith.addi %c0_i32, %c8_i32 : i32
    %c1_i32 = arith.constant 1 : i32
    scf.for %arg7 = %c0_i32 to %6 step %c1_i32  : i32 {
      %c4_i32 = arith.constant 4 : i32
      %7 = arith.muli %arg7, %c4_i32 : i32
      %cst_11 = arith.constant 0.000000e+00 : f32
      %8 = vector.broadcast %cst_11 : f32 to vector<128x128xf32>
      %c0_i32_12 = arith.constant 0 : i32
      %9 = arith.addi %7, %c0_i32_12 : i32
      %10 = arith.index_cast %9 : i32 to index
      %c0_13 = arith.constant 0 : index
      %c0_14 = arith.constant 0 : index
      %11 = vector.load %arg5[%10, %c0_13, %c0_14] : memref<34x34x128xf32, #tpu.memory_space<vmem>>, vector<4x32x128xf32>
      %12 = vector.shape_cast %11 : vector<4x32x128xf32> to vector<128x128xf32>
      %c0_15 = arith.constant 0 : index
      %c0_16 = arith.constant 0 : index
      %c0_17 = arith.constant 0 : index
      %c0_18 = arith.constant 0 : index
      %13 = vector.load %arg2[%c0_15, %c0_16, %c0_17, %c0_18] : memref<3x3x128x128xf32, #tpu.memory_space<vmem>>, vector<1x1x128x128xf32>
      %14 = vector.shape_cast %13 : vector<1x1x128x128xf32> to vector<128x128xf32>
      %cst_19 = arith.constant dense<0.000000e+00> : vector<128x128xf32>
      %15 = tpu.matmul %12, %14, %cst_19 {dimension_numbers = #tpu.dot_dimension_numbers<[1], [0], [0], [1], [0, 0, 1, 1], [], []>} : vector<128x128xf32>, vector<128x128xf32>, vector<128x128xf32> -> vector<128x128xf32>
      %16 = arith.addf %8, %15 : vector<128x128xf32>
      %c0_i32_20 = arith.constant 0 : i32
      %17 = arith.addi %7, %c0_i32_20 : i32
      %18 = arith.index_cast %17 : i32 to index
      %c1_21 = arith.constant 1 : index
      %c0_22 = arith.constant 0 : index
      %19 = vector.load %arg5[%18, %c1_21, %c0_22] : memref<34x34x128xf32, #tpu.memory_space<vmem>>, vector<4x32x128xf32>
      %20 = vector.shape_cast %19 : vector<4x32x128xf32> to vector<128x128xf32>
      %c0_23 = arith.constant 0 : index
      %c1_24 = arith.constant 1 : index
      %c0_25 = arith.constant 0 : index
      %c0_26 = arith.constant 0 : index
      %21 = vector.load %arg2[%c0_23, %c1_24, %c0_25, %c0_26] : memref<3x3x128x128xf32, #tpu.memory_space<vmem>>, vector<1x1x128x128xf32>
      %22 = vector.shape_cast %21 : vector<1x1x128x128xf32> to vector<128x128xf32>
      %cst_27 = arith.constant dense<0.000000e+00> : vector<128x128xf32>
      %23 = tpu.matmul %20, %22, %cst_27 {dimension_numbers = #tpu.dot_dimension_numbers<[1], [0], [0], [1], [0, 0, 1, 1], [], []>} : vector<128x128xf32>, vector<128x128xf32>, vector<128x128xf32> -> vector<128x128xf32>
      %24 = arith.addf %16, %23 : vector<128x128xf32>
      %c0_i32_28 = arith.constant 0 : i32
      %25 = arith.addi %7, %c0_i32_28 : i32
      %26 = arith.index_cast %25 : i32 to index
      %c2 = arith.constant 2 : index
      %c0_29 = arith.constant 0 : index
      %27 = vector.load %arg5[%26, %c2, %c0_29] : memref<34x34x128xf32, #tpu.memory_space<vmem>>, vector<4x32x128xf32>
      %28 = vector.shape_cast %27 : vector<4x32x128xf32> to vector<128x128xf32>
      %c0_30 = arith.constant 0 : index
      %c2_31 = arith.constant 2 : index
      %c0_32 = arith.constant 0 : index
      %c0_33 = arith.constant 0 : index
      %29 = vector.load %arg2[%c0_30, %c2_31, %c0_32, %c0_33] : memref<3x3x128x128xf32, #tpu.memory_space<vmem>>, vector<1x1x128x128xf32>
      %30 = vector.shape_cast %29 : vector<1x1x128x128xf32> to vector<128x128xf32>
      %cst_34 = arith.constant dense<0.000000e+00> : vector<128x128xf32>
      %31 = tpu.matmul %28, %30, %cst_34 {dimension_numbers = #tpu.dot_dimension_numbers<[1], [0], [0], [1], [0, 0, 1, 1], [], []>} : vector<128x128xf32>, vector<128x128xf32>, vector<128x128xf32> -> vector<128x128xf32>
      %32 = arith.addf %24, %31 : vector<128x128xf32>
      %c1_i32_35 = arith.constant 1 : i32
      %33 = arith.addi %7, %c1_i32_35 : i32
      %34 = arith.index_cast %33 : i32 to index
      %c0_36 = arith.constant 0 : index
      %c0_37 = arith.constant 0 : index
      %35 = vector.load %arg5[%34, %c0_36, %c0_37] : memref<34x34x128xf32, #tpu.memory_space<vmem>>, vector<4x32x128xf32>
      %36 = vector.shape_cast %35 : vector<4x32x128xf32> to vector<128x128xf32>
      %c1_38 = arith.constant 1 : index
      %c0_39 = arith.constant 0 : index
      %c0_40 = arith.constant 0 : index
      %c0_41 = arith.constant 0 : index
      %37 = vector.load %arg2[%c1_38, %c0_39, %c0_40, %c0_41] : memref<3x3x128x128xf32, #tpu.memory_space<vmem>>, vector<1x1x128x128xf32>
      %38 = vector.shape_cast %37 : vector<1x1x128x128xf32> to vector<128x128xf32>
      %cst_42 = arith.constant dense<0.000000e+00> : vector<128x128xf32>
      %39 = tpu.matmul %36, %38, %cst_42 {dimension_numbers = #tpu.dot_dimension_numbers<[1], [0], [0], [1], [0, 0, 1, 1], [], []>} : vector<128x128xf32>, vector<128x128xf32>, vector<128x128xf32> -> vector<128x128xf32>
      %40 = arith.addf %32, %39 : vector<128x128xf32>
      %c1_i32_43 = arith.constant 1 : i32
      %41 = arith.addi %7, %c1_i32_43 : i32
      %42 = arith.index_cast %41 : i32 to index
      %c1_44 = arith.constant 1 : index
      %c0_45 = arith.constant 0 : index
      %43 = vector.load %arg5[%42, %c1_44, %c0_45] : memref<34x34x128xf32, #tpu.memory_space<vmem>>, vector<4x32x128xf32>
      %44 = vector.shape_cast %43 : vector<4x32x128xf32> to vector<128x128xf32>
      %c1_46 = arith.constant 1 : index
      %c1_47 = arith.constant 1 : index
      %c0_48 = arith.constant 0 : index
      %c0_49 = arith.constant 0 : index
      %45 = vector.load %arg2[%c1_46, %c1_47, %c0_48, %c0_49] : memref<3x3x128x128xf32, #tpu.memory_space<vmem>>, vector<1x1x128x128xf32>
      %46 = vector.shape_cast %45 : vector<1x1x128x128xf32> to vector<128x128xf32>
      %cst_50 = arith.constant dense<0.000000e+00> : vector<128x128xf32>
      %47 = tpu.matmul %44, %46, %cst_50 {dimension_numbers = #tpu.dot_dimension_numbers<[1], [0], [0], [1], [0, 0, 1, 1], [], []>} : vector<128x128xf32>, vector<128x128xf32>, vector<128x128xf32> -> vector<128x128xf32>
      %48 = arith.addf %40, %47 : vector<128x128xf32>
      %c1_i32_51 = arith.constant 1 : i32
      %49 = arith.addi %7, %c1_i32_51 : i32
      %50 = arith.index_cast %49 : i32 to index
      %c2_52 = arith.constant 2 : index
      %c0_53 = arith.constant 0 : index
      %51 = vector.load %arg5[%50, %c2_52, %c0_53] : memref<34x34x128xf32, #tpu.memory_space<vmem>>, vector<4x32x128xf32>
      %52 = vector.shape_cast %51 : vector<4x32x128xf32> to vector<128x128xf32>
      %c1_54 = arith.constant 1 : index
      %c2_55 = arith.constant 2 : index
      %c0_56 = arith.constant 0 : index
      %c0_57 = arith.constant 0 : index
      %53 = vector.load %arg2[%c1_54, %c2_55, %c0_56, %c0_57] : memref<3x3x128x128xf32, #tpu.memory_space<vmem>>, vector<1x1x128x128xf32>
      %54 = vector.shape_cast %53 : vector<1x1x128x128xf32> to vector<128x128xf32>
      %cst_58 = arith.constant dense<0.000000e+00> : vector<128x128xf32>
      %55 = tpu.matmul %52, %54, %cst_58 {dimension_numbers = #tpu.dot_dimension_numbers<[1], [0], [0], [1], [0, 0, 1, 1], [], []>} : vector<128x128xf32>, vector<128x128xf32>, vector<128x128xf32> -> vector<128x128xf32>
      %56 = arith.addf %48, %55 : vector<128x128xf32>
      %c2_i32 = arith.constant 2 : i32
      %57 = arith.addi %7, %c2_i32 : i32
      %58 = arith.index_cast %57 : i32 to index
      %c0_59 = arith.constant 0 : index
      %c0_60 = arith.constant 0 : index
      %59 = vector.load %arg5[%58, %c0_59, %c0_60] : memref<34x34x128xf32, #tpu.memory_space<vmem>>, vector<4x32x128xf32>
      %60 = vector.shape_cast %59 : vector<4x32x128xf32> to vector<128x128xf32>
      %c2_61 = arith.constant 2 : index
      %c0_62 = arith.constant 0 : index
      %c0_63 = arith.constant 0 : index
      %c0_64 = arith.constant 0 : index
      %61 = vector.load %arg2[%c2_61, %c0_62, %c0_63, %c0_64] : memref<3x3x128x128xf32, #tpu.memory_space<vmem>>, vector<1x1x128x128xf32>
      %62 = vector.shape_cast %61 : vector<1x1x128x128xf32> to vector<128x128xf32>
      %cst_65 = arith.constant dense<0.000000e+00> : vector<128x128xf32>
      %63 = tpu.matmul %60, %62, %cst_65 {dimension_numbers = #tpu.dot_dimension_numbers<[1], [0], [0], [1], [0, 0, 1, 1], [], []>} : vector<128x128xf32>, vector<128x128xf32>, vector<128x128xf32> -> vector<128x128xf32>
      %64 = arith.addf %56, %63 : vector<128x128xf32>
      %c2_i32_66 = arith.constant 2 : i32
      %65 = arith.addi %7, %c2_i32_66 : i32
      %66 = arith.index_cast %65 : i32 to index
      %c1_67 = arith.constant 1 : index
      %c0_68 = arith.constant 0 : index
      %67 = vector.load %arg5[%66, %c1_67, %c0_68] : memref<34x34x128xf32, #tpu.memory_space<vmem>>, vector<4x32x128xf32>
      %68 = vector.shape_cast %67 : vector<4x32x128xf32> to vector<128x128xf32>
      %c2_69 = arith.constant 2 : index
      %c1_70 = arith.constant 1 : index
      %c0_71 = arith.constant 0 : index
      %c0_72 = arith.constant 0 : index
      %69 = vector.load %arg2[%c2_69, %c1_70, %c0_71, %c0_72] : memref<3x3x128x128xf32, #tpu.memory_space<vmem>>, vector<1x1x128x128xf32>
      %70 = vector.shape_cast %69 : vector<1x1x128x128xf32> to vector<128x128xf32>
      %cst_73 = arith.constant dense<0.000000e+00> : vector<128x128xf32>
      %71 = tpu.matmul %68, %70, %cst_73 {dimension_numbers = #tpu.dot_dimension_numbers<[1], [0], [0], [1], [0, 0, 1, 1], [], []>} : vector<128x128xf32>, vector<128x128xf32>, vector<128x128xf32> -> vector<128x128xf32>
      %72 = arith.addf %64, %71 : vector<128x128xf32>
      %c2_i32_74 = arith.constant 2 : i32
      %73 = arith.addi %7, %c2_i32_74 : i32
      %74 = arith.index_cast %73 : i32 to index
      %c2_75 = arith.constant 2 : index
      %c0_76 = arith.constant 0 : index
      %75 = vector.load %arg5[%74, %c2_75, %c0_76] : memref<34x34x128xf32, #tpu.memory_space<vmem>>, vector<4x32x128xf32>
      %76 = vector.shape_cast %75 : vector<4x32x128xf32> to vector<128x128xf32>
      %c2_77 = arith.constant 2 : index
      %c2_78 = arith.constant 2 : index
      %c0_79 = arith.constant 0 : index
      %c0_80 = arith.constant 0 : index
      %77 = vector.load %arg2[%c2_77, %c2_78, %c0_79, %c0_80] : memref<3x3x128x128xf32, #tpu.memory_space<vmem>>, vector<1x1x128x128xf32>
      %78 = vector.shape_cast %77 : vector<1x1x128x128xf32> to vector<128x128xf32>
      %cst_81 = arith.constant dense<0.000000e+00> : vector<128x128xf32>
      %79 = tpu.matmul %76, %78, %cst_81 {dimension_numbers = #tpu.dot_dimension_numbers<[1], [0], [0], [1], [0, 0, 1, 1], [], []>} : vector<128x128xf32>, vector<128x128xf32>, vector<128x128xf32> -> vector<128x128xf32>
      %80 = arith.addf %72, %79 : vector<128x128xf32>
      %81 = vector.broadcast %5 : vector<1x128xf32> to vector<128x128xf32>
      %82 = arith.addf %80, %81 : vector<128x128xf32>
      %cst_82 = arith.constant 0.000000e+00 : f32
      %83 = vector.broadcast %cst_82 : f32 to vector<128x128xf32>
      %84 = arith.maximumf %82, %83 : vector<128x128xf32>
      %85 = vector.shape_cast %84 : vector<128x128xf32> to vector<4x32x128xf32>
      %c0_83 = arith.constant 0 : index
      %86 = arith.index_cast %7 : i32 to index
      %c0_84 = arith.constant 0 : index
      %c0_85 = arith.constant 0 : index
      %87 = vector.load %arg4[%c0_83, %86, %c0_84, %c0_85] : memref<1x32x32x128xf32, #tpu.memory_space<vmem>>, vector<1x4x32x128xf32>
      %88 = vector.shape_cast %87 : vector<1x4x32x128xf32> to vector<4x32x128xf32>
      %89 = vector.shape_cast %85 : vector<4x32x128xf32> to vector<1x4x32x128xf32>
      tpu.vector_store %arg4[%c0_83, %86, %c0_84, %c0_85], %89 {strides = array<i32>} : memref<1x32x32x128xf32, #tpu.memory_space<vmem>>, vector<1x4x32x128xf32>,
    }
    %c8_i32_10 = arith.constant 8 : i32
    return
  }
  func.func @transform_0(%arg0: i32) -> (i32, i32, i32, i32) {
    %c0_i32 = arith.constant 0 : i32
    %c0_i32_0 = arith.constant 0 : i32
    %c0_i32_1 = arith.constant 0 : i32
    %c0_i32_2 = arith.constant 0 : i32
    return %arg0, %c0_i32, %c0_i32_0, %c0_i32_1 : i32, i32, i32, i32
  }
  func.func @transform_1(%arg0: i32) -> (i32, i32, i32, i32) {
    %c0_i32 = arith.constant 0 : i32
    %c0_i32_0 = arith.constant 0 : i32
    %c0_i32_1 = arith.constant 0 : i32
    %c0_i32_2 = arith.constant 0 : i32
    %c0_i32_3 = arith.constant 0 : i32
    return %c0_i32, %c0_i32_0, %c0_i32_1, %c0_i32_2 : i32, i32, i32, i32
  }
  func.func @transform_2(%arg0: i32) -> (i32, i32) {
    %c0_i32 = arith.constant 0 : i32
    %c0_i32_0 = arith.constant 0 : i32
    %c0_i32_1 = arith.constant 0 : i32
    return %c0_i32, %c0_i32_0 : i32, i32
  }
  func.func @transform_3(%arg0: i32) -> (i32, i32, i32, i32) {
    %c0_i32 = arith.constant 0 : i32
    %c0_i32_0 = arith.constant 0 : i32
    %c0_i32_1 = arith.constant 0 : i32
    %c0_i32_2 = arith.constant 0 : i32
    return %arg0, %c0_i32, %c0_i32_0, %c0_i32_1 : i32, i32, i32, i32
  }
}

</mosaic_0001>

<bundles_post_ra>
// kernel: tpu_custom_call.1
= control target key start
LH: loop header
LB: loop body
LE: loop exit
PB: predicated region body
PF: predicated region fallthrough
CT: control target
= control target key end

     0   :  { %8 = vsyncpa [#allocation5], 0  ;;  %s4678_s0 = inlined_call_operand.hbm [shape: f32[2,32,32,128], index: 0, kind: input, shape index: {}]   ;;  %s4679_s1 = inlined_call_operand.hbm [shape: f32[3,3,128,128], index: 1, kind: input, shape index: {}]   ;;  %s4680_s2 = inlined_call_operand.vmem [shape: f32[1,128], index: 2, kind: input, shape index: {}]   ;;  %s4681_s3 = inlined_call_operand.hbm [shape: f32[2,32,32,128], index: 3, kind: output, shape index: {}]  }
   0x1   :  { %10 = vsyncpa [#allocation5 + $0x1], 0 }
   0x2   :  { %11 = vsyncpa [#allocation8], 0 }
   0x3   :  { %12 = vsyncpa [#allocation6], 0 }
   0x4   :  { %14 = vsyncpa [#allocation6 + $0x1], 0  ;;  %s3707_s12 = smov 0   ;;  %s3709_s13 = smov 0  }
   0x5   :  { %s3711_s14 = smov 0   ;;  %s3713_s15 = smov 0  }
   0x6 LB: > { %s3728_s16 = sadd.s32 4294967295, %s3673_s15   ;;  %s2530_s17 = sadd.s32 4294967294, %s3673_s15   ;;  %s3673_s15 = sphi %s3713_s15, %s4744_s15   ;;  %s3669_s14 = sphi %s3711_s14, %s4743_s14   ;;  %s3665_s13 = sphi %s3709_s13, %s4742_s13   ;;  %s3661_s12 = sphi %s3707_s12, %s4741_s12  }
   0x7   : > { %p40_p0 = scmp.ne.s32.totalorder %s3665_s13, %s3661_s12  ;;  %p4682_p1 = scmp.eq.s32.totalorder %s3728_s16, 0 }
   0x8   : > { %p112_p3 = scmp.eq.s32.totalorder %s2530_s17, 1  ;;  %p2531_p5 = scmp.ge.s32.totalorder %s3673_s15, 1 }
   0x9   : > { %p3737_p4 = por %p4682_p1, %p40_p0  ;;  %p119_p7 = scmp.lt.s32.totalorder %s3673_s15, 3 }
   0xa   : > { %p3742_p6 = por %p112_p3, %p40_p0  ;;  %s3679_s21 = smov [#allocation7]  }
   0xb   : > { %s4687_s18 = scalar_select %p3737_p4, 1, 0 }
   0xc   : > { %s4688_s19 = scalar_select %p3742_p6, 1, 0 }
   0xd   : > { %p3747_p8 = pnand %p2531_p5, %p119_p7  ;;  %s131_s22 = sshll.u32 %s3679_s21, 4  ;;  %s132_s22 = int_to_ptr.vmem [resolvable:$true] %s131_s22 }
   0xe   : > { %s3761_s24 = sadd.s32 1, %s3673_s15   ;;  %s27_s25 = sadd.s32 1, %s3669_s14 }
   0xf   : > { %s4689_s20 = scalar_select %p3747_p8, 1, 0 }
  0x10   : > { %p3485_p9 = pneg %p3747_p8  ;;  %s24_s26 = ssub.s32 %s3673_s15, %s3761_s24 }
  0x11   : > { %s3558_s27 = scalar_lea.vmem %s132_s22, 18432  ;;  %p3566_p5 = scmp.lt.s32.totalorder %s132_s22, %s132_s22 }
  0x12   : > { %p3756_p11 = pnand %p3485_p9, %p4682_p1  ;;  %p3559_p13 = scmp.ne.s32.totalorder %s132_s22, %s3558_s27 }
  0x13   : > { %p3567_p7 = scmp.lt.s32.totalorder %s3558_s27, %s3558_s27 }
  0x14   : > { %p3549_p12 = pneg %p3756_p11 }
  0x15   : > { %p3568_p10 = por %p3567_p7, %p3566_p5 }
  0x16   : > { %p3561_p0 = pnand %p3559_p13, %p3549_p12 }
  0x18   : > { %p3562_p3 = pneg %p3561_p0 }
  0x1a   : > { %p3569_p2 = pnand %p3568_p10, %p3562_p3 }
  0x1c   : > { %3572 = shalt.err (!%p3569_p2)
}
  0x1d   : > { %s3680_s28 = smov 128   ;;  %s3681_s29 = smov 8  }
  0x1e   : > { %3488 = dma.hbm_to_vmem [thread:$0]  (!%p3756_p11), %s4679_s1, 18432, %s132_s22, [#allocation8], %s3680_s28, %s3680_s28, %s3681_s29  }
  0x1f   : > { %p25_p2 = scmp.eq.s32.totalorder %s24_s26, 0  ;;  %p34_p9 = scmp.ne.s32.totalorder %s3669_s14, %s3665_s13 }
  0x20   : > { %p35_p10 = scmp.eq.s32.totalorder %s3673_s15, 0  ;;  %p3498_p12 = scmp.lt.s32.totalorder %s3673_s15, 2 }
  0x21   : > { %s3781_s5 = scalar_select %p25_p2, %s3669_s14, %s27_s25  }
  0x22   : > { %p36_p13 = por %p35_p10, %p34_p9  ;;  %p4691_p0 = scmp.eq.s32.totalorder %s3728_s16, 1 }
  0x23   : > { %s148_s7 = sand.u32 1, %s3669_s14   ;;  %s2650_s8 = sshll.u32 %s3673_s15, 14 }
  0x24   : > { %p3785_p3 = por %p4691_p0, %p34_p9  ;;  %s2534_s9 = sshll.u32 %s148_s7, 10 }
  0x25   : > { %s3794_s17 = scalar_lea.hbm %s4678_s0, %s2650_s8  ;;  %s152_s21 = scalar_lea.vmem [#allocation4], %s2534_s9 }
  0x26   : > { %s4692_s6 = scalar_select %p3785_p3, 1, 0 }
  0x27   : > { %s159_s22 = sshll.u32 %s152_s21, 4  ;;  %p3796_p11 = pnand %p3498_p12, %p36_p13  ;;  %s3800_s22 = int_to_ptr.vmem [resolvable:$true] %s159_s22 }
  0x28   : > { %s3802_s25 = scalar_lea.sflag [#allocation5], %s148_s7  ;;  %s3573_s26 = scalar_lea.hbm %s3794_s17, 16384 }
  0x29   : > { %p3574_p5 = scmp.ne.s32.totalorder %s3794_s17, %s3573_s26  ;;  %p3575_p7 = pneg %p3796_p11 }
  0x2a   : > { %s3578_s4 = scalar_lea.hbm %s4678_s0, 32768  ;;  %p3579_p10 = scmp.lt.s32.totalorder %s3794_s17, %s4678_s0 }
  0x2b   : > { %p3576_p2 = pnand %p3575_p7, %p3574_p5  ;;  %p3580_p12 = scmp.lt.s32.totalorder %s3578_s4, %s3573_s26 }
  0x2d   : > { %p3577_p9 = pneg %p3576_p2  ;;  %p3581_p13 = por %p3580_p12, %p3579_p10 }
  0x2f   : > { %p3582_p0 = pnand %p3581_p13, %p3577_p9 }
  0x31   : > { %3585 = shalt.err (!%p3582_p0)
}
  0x32   : > { %s3586_s7 = scalar_lea.vmem %s3800_s22, 16384  ;;  %s3682_s10 = smov [#allocation4]  }
  0x33   : > { %p3587_p1 = scmp.ne.s32.totalorder %s3800_s22, %s3586_s7  ;;  %s3591_s11 = sshll.u32 %s3682_s10, 4  ;;  %s3592_s11 = int_to_ptr.vmem [resolvable:$false] %s3591_s11 }
  0x34   : > { %s3593_s21 = scalar_lea.vmem %s3592_s11, 32768  ;;  %p3594_p2 = scmp.lt.s32.totalorder %s3800_s22, %s3592_s11 }
  0x35   : > { %p3589_p6 = pnand %p3587_p1, %p3575_p7  ;;  %p3595_p3 = scmp.lt.s32.totalorder %s3593_s21, %s3586_s7 }
  0x37   : > { %p3590_p5 = pneg %p3589_p6  ;;  %p3596_p4 = por %p3595_p3, %p3594_p2 }
  0x39   : > { %p3597_p8 = pnand %p3596_p4, %p3590_p5 }
  0x3b   : > { %3600 = shalt.err (!%p3597_p8)
}
  0x3c   : > { %3492 = dma.hbm_to_vmem [thread:$0]  (!%p3796_p11), %s3794_s17, 16384, %s3800_s22, %s3802_s25, %s3680_s28, %s3680_s28, %s3681_s29  }
  0x3d   : > { %p4694_p1 = scmp.ne.s32.totalorder %s4689_s20, 0 }
  0x3f   : > { %171 = sbr.rel (%p4694_p1) target bundleno = 680 (0x2a8), region = 32 }
  0x44   : > { %s3829_s26 = sand.u32 1, %s3665_s13   ;;  %p4695_p4 = scmp.ne.s32.totalorder %s4687_s18, 0 }
  0x45   : > { %s2538_s27 = sshll.u32 %s3829_s26, 10  ;;  %s174_s30 = scalar_lea.sflag [#allocation5], %s3829_s26 }
  0x46   : > { %s3835_s23 = scalar_lea.vmem [#allocation4], %s2538_s27 }
  0x47   : > { %3648 = dma.done.wait (%p4695_p4), %s174_s30, 16384  }
  0x48   : > { %3650 = vsyncadd (%p4695_p4), %s174_s30, 4294950912  ;;  %p4696_p6 = scmp.eq.s32.totalorder %s3728_s16, 0 }
  0x4a   : > { %3652 = dma.done.wait (%p4696_p6), [#allocation8], 18432   ;;  %p4697_p8 = pmov %p4696_p6 }
  0x4b   : > { %v3683_v0 = vmov 0.0   ;;  %v4018_v1 = vld [vmem:[%s4680_s2] ss:$0 sm:$0xff]  ;;  %v374_v2 = vld [vmem:[%s3835_s23] sm:$0xff]  ;;  %v375_v3 = vld [vmem:[%s3835_s23 + $0x8] sm:$0xff]  ;;  %s4150_s28 = scalar_lea.vmem [#allocation9], %s2538_s27 }
  0x4c   : > { %3654 = vsyncadd (%p4697_p8), [#allocation8], 4294948864  ;;  %209 = vst [vmem:[#allocation2 + $0x28] sm:$0xff] %v3683_v0  ;;  %v376_v4 = vld [vmem:[%s3835_s23 + $0x10] sm:$0xff]  ;;  %v377_v5 = vld [vmem:[%s3835_s23 + $0x18] sm:$0xff]  ;;  %s4152_s29 = smov 0  }
  0x4d   : > { %204 = vst [vmem:[#allocation2] sm:$0xff] %v3683_v0  ;;  %205 = vst [vmem:[#allocation2 + $0x8] sm:$0xff] %v3683_v0  ;;  %v378_v6 = vld [vmem:[%s3835_s23 + $0x20] sm:$0xff]  ;;  %v379_v7 = vld [vmem:[%s3835_s23 + $0x28] sm:$0xff] }
  0x4e   : > { %206 = vst [vmem:[#allocation2 + $0x10] sm:$0xff] %v3683_v0  ;;  %207 = vst [vmem:[#allocation2 + $0x18] sm:$0xff] %v3683_v0  ;;  %v380_v8 = vld [vmem:[%s3835_s23 + $0x30] sm:$0xff]  ;;  %v381_v9 = vld [vmem:[%s3835_s23 + $0x38] sm:$0xff] }
  0x4f   : > { %208 = vst [vmem:[#allocation2 + $0x20] sm:$0x3] %v3683_v0  ;;  %210 = vst [vmem:[#allocation2 + $0x30] sm:$0xff] %v3683_v0  ;;  %v382_v10 = vld [vmem:[%s3835_s23 + $0x40] sm:$0xff]  ;;  %v383_v11 = vld [vmem:[%s3835_s23 + $0x48] sm:$0xff] }
  0x50   : > { %211 = vst [vmem:[#allocation2 + $0x38] sm:$0xff] %v3683_v0  ;;  %212 = vst [vmem:[#allocation2 + $0x40] sm:$0xff] %v3683_v0  ;;  %v384_v12 = vld [vmem:[%s3835_s23 + $0x50] sm:$0xff]  ;;  %v385_v13 = vld [vmem:[%s3835_s23 + $0x58] sm:$0xff] }
  0x51   : > { %213 = vst [vmem:[#allocation2 + $0x48] sm:$0x3] %v3683_v0  ;;  %214 = vst [vmem:[#allocation2 + $0x50] sm:$0xff] %v3683_v0  ;;  %v386_v14 = vld [vmem:[%s3835_s23 + $0x60] sm:$0xff]  ;;  %v387_v15 = vld [vmem:[%s3835_s23 + $0x68] sm:$0xff] }
  0x52   : > { %215 = vst [vmem:[#allocation2 + $0x58] sm:$0xff] %v3683_v0  ;;  %216 = vst [vmem:[#allocation2 + $0x60] sm:$0xff] %v3683_v0  ;;  %v388_v16 = vld [vmem:[%s3835_s23 + $0x70] sm:$0xff]  ;;  %v389_v17 = vld [vmem:[%s3835_s23 + $0x78] sm:$0xff] }
  0x53   : > { %217 = vst [vmem:[#allocation2 + $0x68] sm:$0xff] %v3683_v0  ;;  %218 = vst [vmem:[#allocation2 + $0x70] sm:$0x3] %v3683_v0  ;;  %v390_v18 = vld [vmem:[%s3835_s23 + $0x80] sm:$0xff]  ;;  %v391_v19 = vld [vmem:[%s3835_s23 + $0x88] sm:$0xff] }
  0x54   : > { %219 = vst [vmem:[#allocation2 + $0x78] sm:$0xff] %v3683_v0  ;;  %220 = vst [vmem:[#allocation2 + $0x80] sm:$0xff] %v3683_v0  ;;  %v392_v20 = vld [vmem:[%s3835_s23 + $0x90] sm:$0xff]  ;;  %v393_v21 = vld [vmem:[%s3835_s23 + $0x98] sm:$0xff] }
  0x55   : > { %221 = vst [vmem:[#allocation2 + $0x88] sm:$0xff] %v3683_v0  ;;  %222 = vst [vmem:[#allocation2 + $0x90] sm:$0xff] %v3683_v0  ;;  %v394_v22 = vld [vmem:[%s3835_s23 + $0xa0] sm:$0xff]  ;;  %v395_v23 = vld [vmem:[%s3835_s23 + $0xa8] sm:$0xff] }
  0x56   : > { %223 = vst [vmem:[#allocation2 + $0x98] sm:$0x3] %v3683_v0  ;;  %224 = vst [vmem:[#allocation2 + $0xa0] sm:$0xff] %v3683_v0  ;;  %v396_v24 = vld [vmem:[%s3835_s23 + $0xb0] sm:$0xff]  ;;  %v397_v25 = vld [vmem:[%s3835_s23 + $0xb8] sm:$0xff] }
  0x57   : > { %225 = vst [vmem:[#allocation2 + $0xa8] sm:$0xff] %v3683_v0  ;;  %226 = vst [vmem:[#allocation2 + $0xb0] sm:$0xff] %v3683_v0  ;;  %v398_v26 = vld [vmem:[%s3835_s23 + $0xc0] sm:$0xff]  ;;  %v399_v27 = vld [vmem:[%s3835_s23 + $0xc8] sm:$0xff] }
  0x58   : > { %227 = vst [vmem:[#allocation2 + $0xb8] sm:$0xff] %v3683_v0  ;;  %228 = vst [vmem:[#allocation2 + $0xc0] sm:$0x3] %v3683_v0  ;;  %v400_v28 = vld [vmem:[%s3835_s23 + $0xd0] sm:$0xff]  ;;  %v401_v29 = vld [vmem:[%s3835_s23 + $0xd8] sm:$0xff] }
  0x59   : > { %229 = vst [vmem:[#allocation2 + $0xc8] sm:$0xff] %v3683_v0  ;;  %230 = vst [vmem:[#allocation2 + $0xd0] sm:$0xff] %v3683_v0  ;;  %v402_v30 = vld [vmem:[%s3835_s23 + $0xe0] sm:$0xff]  ;;  %v403_v31 = vld [vmem:[%s3835_s23 + $0xe8] sm:$0xff] }
  0x5a   : > { %231 = vst [vmem:[#allocation2 + $0xd8] sm:$0xff] %v3683_v0  ;;  %232 = vst [vmem:[#allocation2 + $0xe0] sm:$0xff] %v3683_v0  ;;  %v404_v32 = vld [vmem:[%s3835_s23 + $0xf0] sm:$0xff]  ;;  %v405_v33 = vld [vmem:[%s3835_s23 + $0xf8] sm:$0xff] }
  0x5b   : > { %233 = vst [vmem:[#allocation2 + $0xe8] sm:$0x3] %v3683_v0  ;;  %234 = vst [vmem:[#allocation2 + $0xf0] sm:$0xff] %v3683_v0  ;;  %v406_v34 = vld [vmem:[%s3835_s23 + $0x100] sm:$0xff]  ;;  %v407_v35 = vld [vmem:[%s3835_s23 + $0x108] sm:$0xff] }
  0x5c   : > { %235 = vst [vmem:[#allocation2 + $0xf8] sm:$0xff] %v3683_v0  ;;  %236 = vst [vmem:[#allocation2 + $0x100] sm:$0xff] %v3683_v0  ;;  %v408_v36 = vld [vmem:[%s3835_s23 + $0x110] sm:$0xff]  ;;  %v409_v37 = vld [vmem:[%s3835_s23 + $0x118] sm:$0xff] }
  0x5d   : > { %237 = vst [vmem:[#allocation2 + $0x108] sm:$0xff] %v3683_v0  ;;  %238 = vst [vmem:[#allocation2 + $0x110] sm:$0x3] %v3683_v0  ;;  %v410_v38 = vld [vmem:[%s3835_s23 + $0x120] sm:$0xff]  ;;  %v411_v39 = vld [vmem:[%s3835_s23 + $0x128] sm:$0xff] }
  0x5e   : > { %239 = vst [vmem:[#allocation2 + $0x118] sm:$0xff] %v3683_v0  ;;  %240 = vst [vmem:[#allocation2 + $0x120] sm:$0xff] %v3683_v0  ;;  %v412_v40 = vld [vmem:[%s3835_s23 + $0x130] sm:$0xff]  ;;  %v413_v41 = vld [vmem:[%s3835_s23 + $0x138] sm:$0xff] }
  0x5f   : > { %241 = vst [vmem:[#allocation2 + $0x128] sm:$0xff] %v3683_v0  ;;  %242 = vst [vmem:[#allocation2 + $0x130] sm:$0xff] %v3683_v0  ;;  %v414_v42 = vld [vmem:[%s3835_s23 + $0x140] sm:$0xff]  ;;  %v415_v43 = vld [vmem:[%s3835_s23 + $0x148] sm:$0xff] }
  0x60   : > { %243 = vst [vmem:[#allocation2 + $0x138] sm:$0x3] %v3683_v0  ;;  %244 = vst [vmem:[#allocation2 + $0x140] sm:$0xff] %v3683_v0  ;;  %v416_v44 = vld [vmem:[%s3835_s23 + $0x150] sm:$0xff]  ;;  %v417_v45 = vld [vmem:[%s3835_s23 + $0x158] sm:$0xff] }
  0x61   : > { %245 = vst [vmem:[#allocation2 + $0x148] sm:$0xff] %v3683_v0  ;;  %246 = vst [vmem:[#allocation2 + $0x150] sm:$0xff] %v3683_v0  ;;  %v418_v46 = vld [vmem:[%s3835_s23 + $0x160] sm:$0xff]  ;;  %v419_v47 = vld [vmem:[%s3835_s23 + $0x168] sm:$0xff] }
  0x62   : > { %247 = vst [vmem:[#allocation2 + $0x158] sm:$0xff] %v3683_v0  ;;  %248 = vst [vmem:[#allocation2 + $0x160] sm:$0x3] %v3683_v0  ;;  %v420_v48 = vld [vmem:[%s3835_s23 + $0x170] sm:$0xff]  ;;  %v421_v49 = vld [vmem:[%s3835_s23 + $0x178] sm:$0xff] }
  0x63   : > { %249 = vst [vmem:[#allocation2 + $0x168] sm:$0xff] %v3683_v0  ;;  %250 = vst [vmem:[#allocation2 + $0x170] sm:$0xff] %v3683_v0  ;;  %v422_v50 = vld [vmem:[%s3835_s23 + $0x180] sm:$0xff]  ;;  %v423_v51 = vld [vmem:[%s3835_s23 + $0x188] sm:$0xff] }
  0x64   : > { %251 = vst [vmem:[#allocation2 + $0x178] sm:$0xff] %v3683_v0  ;;  %252 = vst [vmem:[#allocation2 + $0x180] sm:$0xff] %v3683_v0  ;;  %v424_v52 = vld [vmem:[%s3835_s23 + $0x190] sm:$0xff]  ;;  %v425_v53 = vld [vmem:[%s3835_s23 + $0x198] sm:$0xff] }
  0x65   : > { %253 = vst [vmem:[#allocation2 + $0x188] sm:$0x3] %v3683_v0  ;;  %254 = vst [vmem:[#allocation2 + $0x190] sm:$0xff] %v3683_v0  ;;  %v426_v54 = vld [vmem:[%s3835_s23 + $0x1a0] sm:$0xff]  ;;  %v427_v55 = vld [vmem:[%s3835_s23 + $0x1a8] sm:$0xff] }
  0x66   : > { %255 = vst [vmem:[#allocation2 + $0x198] sm:$0xff] %v3683_v0  ;;  %256 = vst [vmem:[#allocation2 + $0x1a0] sm:$0xff] %v3683_v0  ;;  %v428_v56 = vld [vmem:[%s3835_s23 + $0x1b0] sm:$0xff]  ;;  %v429_v57 = vld [vmem:[%s3835_s23 + $0x1b8] sm:$0xff] }
  0x67   : > { %257 = vst [vmem:[#allocation2 + $0x1a8] sm:$0xff] %v3683_v0  ;;  %258 = vst [vmem:[#allocation2 + $0x1b0] sm:$0x3] %v3683_v0  ;;  %v430_v58 = vld [vmem:[%s3835_s23 + $0x1c0] sm:$0xff]  ;;  %v431_v59 = vld [vmem:[%s3835_s23 + $0x1c8] sm:$0xff] }
  0x68   : > { %259 = vst [vmem:[#allocation2 + $0x1b8] sm:$0xff] %v3683_v0  ;;  %260 = vst [vmem:[#allocation2 + $0x1c0] sm:$0xff] %v3683_v0  ;;  %v432_v60 = vld [vmem:[%s3835_s23 + $0x1d0] sm:$0xff]  ;;  %v433_v61 = vld [vmem:[%s3835_s23 + $0x1d8] sm:$0xff] }
  0x69   : > { %261 = vst [vmem:[#allocation2 + $0x1c8] sm:$0xff] %v3683_v0  ;;  %262 = vst [vmem:[#allocation2 + $0x1d0] sm:$0xff] %v3683_v0  ;;  %v434_v62 = vld [vmem:[%s3835_s23 + $0x1e0] sm:$0xff]  ;;  %v435_v63 = vld [vmem:[%s3835_s23 + $0x1e8] sm:$0xff] }
  0x6a   : > { %263 = vst [vmem:[#allocation2 + $0x1d8] sm:$0x3] %v3683_v0  ;;  %264 = vst [vmem:[#allocation2 + $0x1e0] sm:$0xff] %v3683_v0 }
  0x6b   : > { %265 = vst [vmem:[#allocation2 + $0x1e8] sm:$0xff] %v3683_v0  ;;  %266 = vst [vmem:[#allocation2 + $0x1f0] sm:$0xff] %v3683_v0 }
  0x6c   : > { %267 = vst [vmem:[#allocation2 + $0x1f8] sm:$0xff] %v3683_v0  ;;  %268 = vst [vmem:[#allocation2 + $0x200] sm:$0x3] %v3683_v0 }
  0x6d   : > { %269 = vst [vmem:[#allocation2 + $0x208] sm:$0xff] %v3683_v0  ;;  %270 = vst [vmem:[#allocation2 + $0x210] sm:$0xff] %v3683_v0 }
  0x6e   : > { %271 = vst [vmem:[#allocation2 + $0x218] sm:$0xff] %v3683_v0  ;;  %272 = vst [vmem:[#allocation2 + $0x220] sm:$0xff] %v3683_v0 }
  0x6f   : > { %273 = vst [vmem:[#allocation2 + $0x228] sm:$0x3] %v3683_v0  ;;  %274 = vst [vmem:[#allocation2 + $0x230] sm:$0xff] %v3683_v0 }
  0x70   : > { %275 = vst [vmem:[#allocation2 + $0x238] sm:$0xff] %v3683_v0  ;;  %276 = vst [vmem:[#allocation2 + $0x240] sm:$0xff] %v3683_v0 }
  0x71   : > { %277 = vst [vmem:[#allocation2 + $0x248] sm:$0xff] %v3683_v0  ;;  %278 = vst [vmem:[#allocation2 + $0x250] sm:$0x3] %v3683_v0 }
  0x72   : > { %279 = vst [vmem:[#allocation2 + $0x258] sm:$0xff] %v3683_v0  ;;  %280 = vst [vmem:[#allocation2 + $0x260] sm:$0xff] %v3683_v0 }
  0x73   : > { %281 = vst [vmem:[#allocation2 + $0x268] sm:$0xff] %v3683_v0  ;;  %282 = vst [vmem:[#allocation2 + $0x270] sm:$0xff] %v3683_v0 }
  0x74   : > { %283 = vst [vmem:[#allocation2 + $0x278] sm:$0x3] %v3683_v0  ;;  %284 = vst [vmem:[#allocation2 + $0x280] sm:$0xff] %v3683_v0 }
  0x75   : > { %285 = vst [vmem:[#allocation2 + $0x288] sm:$0xff] %v3683_v0  ;;  %286 = vst [vmem:[#allocation2 + $0x290] sm:$0xff] %v3683_v0 }
  0x76   : > { %287 = vst [vmem:[#allocation2 + $0x298] sm:$0xff] %v3683_v0  ;;  %288 = vst [vmem:[#allocation2 + $0x2a0] sm:$0x3] %v3683_v0 }
  0x77   : > { %289 = vst [vmem:[#allocation2 + $0x2a8] sm:$0xff] %v3683_v0  ;;  %290 = vst [vmem:[#allocation2 + $0x2b0] sm:$0xff] %v3683_v0 }
  0x78   : > { %291 = vst [vmem:[#allocation2 + $0x2b8] sm:$0xff] %v3683_v0  ;;  %292 = vst [vmem:[#allocation2 + $0x2c0] sm:$0xff] %v3683_v0 }
  0x79   : > { %293 = vst [vmem:[#allocation2 + $0x2c8] sm:$0x3] %v3683_v0  ;;  %294 = vst [vmem:[#allocation2 + $0x2d0] sm:$0xff] %v3683_v0 }
  0x7a   : > { %295 = vst [vmem:[#allocation2 + $0x2d8] sm:$0xff] %v3683_v0  ;;  %296 = vst [vmem:[#allocation2 + $0x2e0] sm:$0xff] %v3683_v0 }
  0x7b   : > { %297 = vst [vmem:[#allocation2 + $0x2e8] sm:$0xff] %v3683_v0  ;;  %298 = vst [vmem:[#allocation2 + $0x2f0] sm:$0x3] %v3683_v0 }
  0x7c   : > { %299 = vst [vmem:[#allocation2 + $0x2f8] sm:$0xff] %v3683_v0  ;;  %300 = vst [vmem:[#allocation2 + $0x300] sm:$0xff] %v3683_v0 }
  0x7d   : > { %301 = vst [vmem:[#allocation2 + $0x308] sm:$0xff] %v3683_v0  ;;  %302 = vst [vmem:[#allocation2 + $0x310] sm:$0xff] %v3683_v0 }
  0x7e   : > { %303 = vst [vmem:[#allocation2 + $0x318] sm:$0x3] %v3683_v0  ;;  %304 = vst [vmem:[#allocation2 + $0x320] sm:$0xff] %v3683_v0 }
  0x7f   : > { %305 = vst [vmem:[#allocation2 + $0x328] sm:$0xff] %v3683_v0  ;;  %306 = vst [vmem:[#allocation2 + $0x330] sm:$0xff] %v3683_v0 }
  0x80   : > { %307 = vst [vmem:[#allocation2 + $0x338] sm:$0xff] %v3683_v0  ;;  %308 = vst [vmem:[#allocation2 + $0x340] sm:$0x3] %v3683_v0 }
  0x81   : > { %309 = vst [vmem:[#allocation2 + $0x348] sm:$0xff] %v3683_v0  ;;  %310 = vst [vmem:[#allocation2 + $0x350] sm:$0xff] %v3683_v0 }
  0x82   : > { %311 = vst [vmem:[#allocation2 + $0x358] sm:$0xff] %v3683_v0  ;;  %312 = vst [vmem:[#allocation2 + $0x360] sm:$0xff] %v3683_v0 }
  0x83   : > { %313 = vst [vmem:[#allocation2 + $0x368] sm:$0x3] %v3683_v0  ;;  %314 = vst [vmem:[#allocation2 + $0x370] sm:$0xff] %v3683_v0 }
  0x84   : > { %315 = vst [vmem:[#allocation2 + $0x378] sm:$0xff] %v3683_v0  ;;  %316 = vst [vmem:[#allocation2 + $0x380] sm:$0xff] %v3683_v0 }
  0x85   : > { %317 = vst [vmem:[#allocation2 + $0x388] sm:$0xff] %v3683_v0  ;;  %318 = vst [vmem:[#allocation2 + $0x390] sm:$0x3] %v3683_v0 }
  0x86   : > { %319 = vst [vmem:[#allocation2 + $0x398] sm:$0xff] %v3683_v0  ;;  %320 = vst [vmem:[#allocation2 + $0x3a0] sm:$0xff] %v3683_v0 }
  0x87   : > { %321 = vst [vmem:[#allocation2 + $0x3a8] sm:$0xff] %v3683_v0  ;;  %322 = vst [vmem:[#allocation2 + $0x3b0] sm:$0xff] %v3683_v0 }
  0x88   : > { %323 = vst [vmem:[#allocation2 + $0x3b8] sm:$0x3] %v3683_v0  ;;  %324 = vst [vmem:[#allocation2 + $0x3c0] sm:$0xff] %v3683_v0 }
  0x89   : > { %325 = vst [vmem:[#allocation2 + $0x3c8] sm:$0xff] %v3683_v0  ;;  %326 = vst [vmem:[#allocation2 + $0x3d0] sm:$0xff] %v3683_v0 }
  0x8a   : > { %327 = vst [vmem:[#allocation2 + $0x3d8] sm:$0xff] %v3683_v0  ;;  %328 = vst [vmem:[#allocation2 + $0x3e0] sm:$0x3] %v3683_v0 }
  0x8b   : > { %329 = vst [vmem:[#allocation2 + $0x3e8] sm:$0xff] %v3683_v0  ;;  %330 = vst [vmem:[#allocation2 + $0x3f0] sm:$0xff] %v3683_v0 }
  0x8c   : > { %331 = vst [vmem:[#allocation2 + $0x3f8] sm:$0xff] %v3683_v0  ;;  %332 = vst [vmem:[#allocation2 + $0x400] sm:$0xff] %v3683_v0 }
  0x8d   : > { %333 = vst [vmem:[#allocation2 + $0x408] sm:$0x3] %v3683_v0  ;;  %334 = vst [vmem:[#allocation2 + $0x410] sm:$0xff] %v3683_v0 }
  0x8e   : > { %335 = vst [vmem:[#allocation2 + $0x418] sm:$0xff] %v3683_v0  ;;  %336 = vst [vmem:[#allocation2 + $0x420] sm:$0xff] %v3683_v0 }
  0x8f   : > { %337 = vst [vmem:[#allocation2 + $0x428] sm:$0xff] %v3683_v0  ;;  %338 = vst [vmem:[#allocation2 + $0x430] sm:$0x3] %v3683_v0 }
  0x90   : > { %339 = vst [vmem:[#allocation2 + $0x438] sm:$0xff] %v3683_v0  ;;  %340 = vst [vmem:[#allocation2 + $0x440] sm:$0xff] %v3683_v0 }
  0x91   : > { %341 = vst [vmem:[#allocation2 + $0x448] sm:$0xff] %v3683_v0  ;;  %342 = vst [vmem:[#allocation2 + $0x450] sm:$0xff] %v3683_v0 }
  0x92   : > { %343 = vst [vmem:[#allocation2 + $0x458] sm:$0x3] %v3683_v0  ;;  %344 = vst [vmem:[#allocation2 + $0x460] sm:$0xff] %v3683_v0 }
  0x93   : > { %345 = vst [vmem:[#allocation2 + $0x468] sm:$0xff] %v3683_v0  ;;  %346 = vst [vmem:[#allocation2 + $0x470] sm:$0xff] %v3683_v0 }
  0x94   : > { %347 = vst [vmem:[#allocation2 + $0x478] sm:$0xff] %v3683_v0  ;;  %348 = vst [vmem:[#allocation2 + $0x480] sm:$0x3] %v3683_v0 }
  0x95   : > { %349 = vst [vmem:[#allocation2 + $0x488] sm:$0xff] %v3683_v0  ;;  %350 = vst [vmem:[#allocation2 + $0x490] sm:$0xff] %v3683_v0 }
  0x96   : > { %351 = vst [vmem:[#allocation2 + $0x498] sm:$0xff] %v3683_v0  ;;  %352 = vst [vmem:[#allocation2 + $0x4a0] sm:$0xff] %v3683_v0 }
  0x97   : > { %353 = vst [vmem:[#allocation2 + $0x4a8] sm:$0x3] %v3683_v0  ;;  %354 = vst [vmem:[#allocation2 + $0x4b0] sm:$0xff] %v3683_v0 }
  0x98   : > { %355 = vst [vmem:[#allocation2 + $0x4b8] sm:$0xff] %v3683_v0  ;;  %356 = vst [vmem:[#allocation2 + $0x4c0] sm:$0xff] %v3683_v0 }
  0x99   : > { %357 = vst [vmem:[#allocation2 + $0x4c8] sm:$0xff] %v3683_v0  ;;  %358 = vst [vmem:[#allocation2 + $0x4d0] sm:$0x3] %v3683_v0 }
  0x9a   : > { %359 = vst [vmem:[#allocation2 + $0x4d8] sm:$0xff] %v3683_v0  ;;  %360 = vst [vmem:[#allocation2 + $0x4e0] sm:$0xff] %v3683_v0 }
  0x9b   : > { %361 = vst [vmem:[#allocation2 + $0x4e8] sm:$0xff] %v3683_v0  ;;  %362 = vst [vmem:[#allocation2 + $0x4f0] sm:$0xff] %v3683_v0 }
  0x9c   : > { %363 = vst [vmem:[#allocation2 + $0x4f8] sm:$0x3] %v3683_v0  ;;  %364 = vst [vmem:[#allocation2 + $0x500] sm:$0xff] %v3683_v0 }
  0x9d   : > { %365 = vst [vmem:[#allocation2 + $0x508] sm:$0xff] %v3683_v0  ;;  %366 = vst [vmem:[#allocation2 + $0x510] sm:$0xff] %v3683_v0 }
  0x9e   : > { %367 = vst [vmem:[#allocation2 + $0x518] sm:$0xff] %v3683_v0  ;;  %368 = vst [vmem:[#allocation2 + $0x520] sm:$0x3] %v3683_v0 }
  0x9f   : > { %369 = vst [vmem:[#allocation2 + $0x528] sm:$0xff] %v3683_v0  ;;  %370 = vst [vmem:[#allocation2 + $0x530] sm:$0xff] %v3683_v0 }
  0xa0   : > { %371 = vst [vmem:[#allocation2 + $0x538] sm:$0xff] %v3683_v0  ;;  %372 = vst [vmem:[#allocation2 + $0x540] sm:$0xff] %v3683_v0 }
  0xa1   : > { %373 = vst [vmem:[#allocation2 + $0x548] sm:$0x3] %v3683_v0  ;;  %4698 = vst [vmem:[#allocation13_spill] sm:$0xff] %v4018_v1  ;;  %v436_v0 = vld [vmem:[%s3835_s23 + $0x1f0] sm:$0xff] }
  0xa2   : > { %503 = vst [vmem:[#allocation2 + $0x29] sm:$0xff] %v374_v2  ;;  %504 = vst [vmem:[#allocation2 + $0x31] sm:$0xff] %v375_v3  ;;  %v437_v2 = vld [vmem:[%s3835_s23 + $0x1f8] sm:$0xff]  ;;  %v438_v3 = vld [vmem:[%s3835_s23 + $0x200] sm:$0xff] }
  0xa3   : > { %505 = vst [vmem:[#allocation2 + $0x39] sm:$0xff] %v376_v4  ;;  %506 = vst [vmem:[#allocation2 + $0x41] sm:$0xff] %v377_v5  ;;  %v439_v4 = vld [vmem:[%s3835_s23 + $0x208] sm:$0xff]  ;;  %v440_v5 = vld [vmem:[%s3835_s23 + $0x210] sm:$0xff] }
  0xa4   : > { %507 = vst [vmem:[#allocation2 + $0x51] sm:$0xff] %v378_v6  ;;  %508 = vst [vmem:[#allocation2 + $0x59] sm:$0xff] %v379_v7  ;;  %v441_v6 = vld [vmem:[%s3835_s23 + $0x218] sm:$0xff]  ;;  %v442_v7 = vld [vmem:[%s3835_s23 + $0x220] sm:$0xff] }
  0xa5   : > { %509 = vst [vmem:[#allocation2 + $0x61] sm:$0xff] %v380_v8  ;;  %510 = vst [vmem:[#allocation2 + $0x69] sm:$0xff] %v381_v9  ;;  %v443_v8 = vld [vmem:[%s3835_s23 + $0x228] sm:$0xff]  ;;  %v444_v9 = vld [vmem:[%s3835_s23 + $0x230] sm:$0xff] }
  0xa6   : > { %511 = vst [vmem:[#allocation2 + $0x79] sm:$0xff] %v382_v10  ;;  %512 = vst [vmem:[#allocation2 + $0x81] sm:$0xff] %v383_v11  ;;  %v445_v10 = vld [vmem:[%s3835_s23 + $0x238] sm:$0xff]  ;;  %v446_v11 = vld [vmem:[%s3835_s23 + $0x240] sm:$0xff] }
  0xa7   : > { %513 = vst [vmem:[#allocation2 + $0x89] sm:$0xff] %v384_v12  ;;  %514 = vst [vmem:[#allocation2 + $0x91] sm:$0xff] %v385_v13  ;;  %v447_v12 = vld [vmem:[%s3835_s23 + $0x248] sm:$0xff]  ;;  %v448_v13 = vld [vmem:[%s3835_s23 + $0x250] sm:$0xff] }
  0xa8   : > { %515 = vst [vmem:[#allocation2 + $0xa1] sm:$0xff] %v386_v14  ;;  %516 = vst [vmem:[#allocation2 + $0xa9] sm:$0xff] %v387_v15  ;;  %v449_v14 = vld [vmem:[%s3835_s23 + $0x258] sm:$0xff]  ;;  %v450_v15 = vld [vmem:[%s3835_s23 + $0x260] sm:$0xff] }
  0xa9   : > { %517 = vst [vmem:[#allocation2 + $0xb1] sm:$0xff] %v388_v16  ;;  %518 = vst [vmem:[#allocation2 + $0xb9] sm:$0xff] %v389_v17  ;;  %v451_v16 = vld [vmem:[%s3835_s23 + $0x268] sm:$0xff]  ;;  %v452_v17 = vld [vmem:[%s3835_s23 + $0x270] sm:$0xff] }
  0xaa   : > { %519 = vst [vmem:[#allocation2 + $0xc9] sm:$0xff] %v390_v18  ;;  %520 = vst [vmem:[#allocation2 + $0xd1] sm:$0xff] %v391_v19  ;;  %v453_v18 = vld [vmem:[%s3835_s23 + $0x278] sm:$0xff]  ;;  %v454_v19 = vld [vmem:[%s3835_s23 + $0x280] sm:$0xff] }
  0xab   : > { %521 = vst [vmem:[#allocation2 + $0xd9] sm:$0xff] %v392_v20  ;;  %522 = vst [vmem:[#allocation2 + $0xe1] sm:$0xff] %v393_v21  ;;  %v455_v20 = vld [vmem:[%s3835_s23 + $0x288] sm:$0xff]  ;;  %v456_v21 = vld [vmem:[%s3835_s23 + $0x290] sm:$0xff] }
  0xac   : > { %523 = vst [vmem:[#allocation2 + $0xf1] sm:$0xff] %v394_v22  ;;  %524 = vst [vmem:[#allocation2 + $0xf9] sm:$0xff] %v395_v23  ;;  %v457_v22 = vld [vmem:[%s3835_s23 + $0x298] sm:$0xff]  ;;  %v458_v23 = vld [vmem:[%s3835_s23 + $0x2a0] sm:$0xff] }
  0xad   : > { %525 = vst [vmem:[#allocation2 + $0x101] sm:$0xff] %v396_v24  ;;  %526 = vst [vmem:[#allocation2 + $0x109] sm:$0xff] %v397_v25  ;;  %v459_v24 = vld [vmem:[%s3835_s23 + $0x2a8] sm:$0xff]  ;;  %v460_v25 = vld [vmem:[%s3835_s23 + $0x2b0] sm:$0xff] }
  0xae   : > { %527 = vst [vmem:[#allocation2 + $0x119] sm:$0xff] %v398_v26  ;;  %528 = vst [vmem:[#allocation2 + $0x121] sm:$0xff] %v399_v27  ;;  %v461_v26 = vld [vmem:[%s3835_s23 + $0x2b8] sm:$0xff]  ;;  %v462_v27 = vld [vmem:[%s3835_s23 + $0x2c0] sm:$0xff] }
  0xaf   : > { %529 = vst [vmem:[#allocation2 + $0x129] sm:$0xff] %v400_v28  ;;  %530 = vst [vmem:[#allocation2 + $0x131] sm:$0xff] %v401_v29  ;;  %v463_v28 = vld [vmem:[%s3835_s23 + $0x2c8] sm:$0xff]  ;;  %v464_v29 = vld [vmem:[%s3835_s23 + $0x2d0] sm:$0xff] }
  0xb0   : > { %531 = vst [vmem:[#allocation2 + $0x141] sm:$0xff] %v402_v30  ;;  %532 = vst [vmem:[#allocation2 + $0x149] sm:$0xff] %v403_v31  ;;  %v465_v30 = vld [vmem:[%s3835_s23 + $0x2d8] sm:$0xff]  ;;  %v466_v31 = vld [vmem:[%s3835_s23 + $0x2e0] sm:$0xff] }
  0xb1   : > { %533 = vst [vmem:[#allocation2 + $0x151] sm:$0xff] %v404_v32  ;;  %534 = vst [vmem:[#allocation2 + $0x159] sm:$0xff] %v405_v33  ;;  %v467_v32 = vld [vmem:[%s3835_s23 + $0x2e8] sm:$0xff]  ;;  %v468_v33 = vld [vmem:[%s3835_s23 + $0x2f0] sm:$0xff] }
  0xb2   : > { %535 = vst [vmem:[#allocation2 + $0x169] sm:$0xff] %v406_v34  ;;  %536 = vst [vmem:[#allocation2 + $0x171] sm:$0xff] %v407_v35  ;;  %v469_v34 = vld [vmem:[%s3835_s23 + $0x2f8] sm:$0xff]  ;;  %v470_v35 = vld [vmem:[%s3835_s23 + $0x300] sm:$0xff] }
  0xb3   : > { %537 = vst [vmem:[#allocation2 + $0x179] sm:$0xff] %v408_v36  ;;  %538 = vst [vmem:[#allocation2 + $0x181] sm:$0xff] %v409_v37  ;;  %v471_v36 = vld [vmem:[%s3835_s23 + $0x308] sm:$0xff]  ;;  %v472_v37 = vld [vmem:[%s3835_s23 + $0x310] sm:$0xff] }
  0xb4   : > { %539 = vst [vmem:[#allocation2 + $0x191] sm:$0xff] %v410_v38  ;;  %540 = vst [vmem:[#allocation2 + $0x199] sm:$0xff] %v411_v39  ;;  %v473_v38 = vld [vmem:[%s3835_s23 + $0x318] sm:$0xff]  ;;  %v474_v39 = vld [vmem:[%s3835_s23 + $0x320] sm:$0xff] }
  0xb5   : > { %541 = vst [vmem:[#allocation2 + $0x1a1] sm:$0xff] %v412_v40  ;;  %542 = vst [vmem:[#allocation2 + $0x1a9] sm:$0xff] %v413_v41  ;;  %v475_v40 = vld [vmem:[%s3835_s23 + $0x328] sm:$0xff]  ;;  %v476_v41 = vld [vmem:[%s3835_s23 + $0x330] sm:$0xff] }
  0xb6   : > { %543 = vst [vmem:[#allocation2 + $0x1b9] sm:$0xff] %v414_v42  ;;  %544 = vst [vmem:[#allocation2 + $0x1c1] sm:$0xff] %v415_v43  ;;  %v477_v42 = vld [vmem:[%s3835_s23 + $0x338] sm:$0xff]  ;;  %v478_v43 = vld [vmem:[%s3835_s23 + $0x340] sm:$0xff] }
  0xb7   : > { %545 = vst [vmem:[#allocation2 + $0x1c9] sm:$0xff] %v416_v44  ;;  %546 = vst [vmem:[#allocation2 + $0x1d1] sm:$0xff] %v417_v45  ;;  %v479_v44 = vld [vmem:[%s3835_s23 + $0x348] sm:$0xff]  ;;  %v480_v45 = vld [vmem:[%s3835_s23 + $0x350] sm:$0xff] }
  0xb8   : > { %547 = vst [vmem:[#allocation2 + $0x1e1] sm:$0xff] %v418_v46  ;;  %548 = vst [vmem:[#allocation2 + $0x1e9] sm:$0xff] %v419_v47  ;;  %v481_v46 = vld [vmem:[%s3835_s23 + $0x358] sm:$0xff]  ;;  %v482_v47 = vld [vmem:[%s3835_s23 + $0x360] sm:$0xff] }
  0xb9   : > { %549 = vst [vmem:[#allocation2 + $0x1f1] sm:$0xff] %v420_v48  ;;  %550 = vst [vmem:[#allocation2 + $0x1f9] sm:$0xff] %v421_v49  ;;  %v483_v48 = vld [vmem:[%s3835_s23 + $0x368] sm:$0xff]  ;;  %v484_v49 = vld [vmem:[%s3835_s23 + $0x370] sm:$0xff] }
  0xba   : > { %551 = vst [vmem:[#allocation2 + $0x209] sm:$0xff] %v422_v50  ;;  %552 = vst [vmem:[#allocation2 + $0x211] sm:$0xff] %v423_v51  ;;  %v485_v50 = vld [vmem:[%s3835_s23 + $0x378] sm:$0xff]  ;;  %v486_v51 = vld [vmem:[%s3835_s23 + $0x380] sm:$0xff] }
  0xbb   : > { %553 = vst [vmem:[#allocation2 + $0x219] sm:$0xff] %v424_v52  ;;  %554 = vst [vmem:[#allocation2 + $0x221] sm:$0xff] %v425_v53  ;;  %v487_v52 = vld [vmem:[%s3835_s23 + $0x388] sm:$0xff]  ;;  %v488_v53 = vld [vmem:[%s3835_s23 + $0x390] sm:$0xff] }
  0xbc   : > { %555 = vst [vmem:[#allocation2 + $0x231] sm:$0xff] %v426_v54  ;;  %556 = vst [vmem:[#allocation2 + $0x239] sm:$0xff] %v427_v55  ;;  %v489_v54 = vld [vmem:[%s3835_s23 + $0x398] sm:$0xff]  ;;  %v490_v55 = vld [vmem:[%s3835_s23 + $0x3a0] sm:$0xff] }
  0xbd   : > { %557 = vst [vmem:[#allocation2 + $0x241] sm:$0xff] %v428_v56  ;;  %558 = vst [vmem:[#allocation2 + $0x249] sm:$0xff] %v429_v57  ;;  %v491_v56 = vld [vmem:[%s3835_s23 + $0x3a8] sm:$0xff]  ;;  %v492_v57 = vld [vmem:[%s3835_s23 + $0x3b0] sm:$0xff] }
  0xbe   : > { %559 = vst [vmem:[#allocation2 + $0x259] sm:$0xff] %v430_v58  ;;  %560 = vst [vmem:[#allocation2 + $0x261] sm:$0xff] %v431_v59  ;;  %v493_v58 = vld [vmem:[%s3835_s23 + $0x3b8] sm:$0xff]  ;;  %v494_v59 = vld [vmem:[%s3835_s23 + $0x3c0] sm:$0xff] }
  0xbf   : > { %561 = vst [vmem:[#allocation2 + $0x269] sm:$0xff] %v432_v60  ;;  %562 = vst [vmem:[#allocation2 + $0x271] sm:$0xff] %v433_v61  ;;  %v495_v60 = vld [vmem:[%s3835_s23 + $0x3c8] sm:$0xff]  ;;  %v496_v61 = vld [vmem:[%s3835_s23 + $0x3d0] sm:$0xff] }
  0xc0   : > { %563 = vst [vmem:[#allocation2 + $0x281] sm:$0xff] %v434_v62  ;;  %564 = vst [vmem:[#allocation2 + $0x289] sm:$0xff] %v435_v63  ;;  %v497_v62 = vld [vmem:[%s3835_s23 + $0x3d8] sm:$0xff]  ;;  %v498_v63 = vld [vmem:[%s3835_s23 + $0x3e0] sm:$0xff] }
  0xc1   : > { %565 = vst [vmem:[#allocation2 + $0x291] sm:$0xff] %v436_v0  ;;  %566 = vst [vmem:[#allocation2 + $0x299] sm:$0xff] %v437_v2  ;;  %v499_v0 = vld [vmem:[%s3835_s23 + $0x3e8] sm:$0xff]  ;;  %v500_v2 = vld [vmem:[%s3835_s23 + $0x3f0] sm:$0xff] }
  0xc2   : > { %567 = vst [vmem:[#allocation2 + $0x2a9] sm:$0xff] %v438_v3  ;;  %568 = vst [vmem:[#allocation2 + $0x2b1] sm:$0xff] %v439_v4  ;;  %v501_v3 = vld [vmem:[%s3835_s23 + $0x3f8] sm:$0xff] }
  0xc3   : > { %569 = vst [vmem:[#allocation2 + $0x2b9] sm:$0xff] %v440_v5  ;;  %570 = vst [vmem:[#allocation2 + $0x2c1] sm:$0xff] %v441_v6 }
  0xc4   : > { %571 = vst [vmem:[#allocation2 + $0x2d1] sm:$0xff] %v442_v7  ;;  %572 = vst [vmem:[#allocation2 + $0x2d9] sm:$0xff] %v443_v8 }
  0xc5   : > { %573 = vst [vmem:[#allocation2 + $0x2e1] sm:$0xff] %v444_v9  ;;  %574 = vst [vmem:[#allocation2 + $0x2e9] sm:$0xff] %v445_v10 }
  0xc6   : > { %575 = vst [vmem:[#allocation2 + $0x2f9] sm:$0xff] %v446_v11  ;;  %576 = vst [vmem:[#allocation2 + $0x301] sm:$0xff] %v447_v12 }
  0xc7   : > { %577 = vst [vmem:[#allocation2 + $0x309] sm:$0xff] %v448_v13  ;;  %578 = vst [vmem:[#allocation2 + $0x311] sm:$0xff] %v449_v14 }
  0xc8   : > { %579 = vst [vmem:[#allocation2 + $0x321] sm:$0xff] %v450_v15  ;;  %580 = vst [vmem:[#allocation2 + $0x329] sm:$0xff] %v451_v16 }
  0xc9   : > { %581 = vst [vmem:[#allocation2 + $0x331] sm:$0xff] %v452_v17  ;;  %582 = vst [vmem:[#allocation2 + $0x339] sm:$0xff] %v453_v18 }
  0xca   : > { %583 = vst [vmem:[#allocation2 + $0x349] sm:$0xff] %v454_v19  ;;  %584 = vst [vmem:[#allocation2 + $0x351] sm:$0xff] %v455_v20 }
  0xcb   : > { %585 = vst [vmem:[#allocation2 + $0x359] sm:$0xff] %v456_v21  ;;  %586 = vst [vmem:[#allocation2 + $0x361] sm:$0xff] %v457_v22 }
  0xcc   : > { %587 = vst [vmem:[#allocation2 + $0x371] sm:$0xff] %v458_v23  ;;  %588 = vst [vmem:[#allocation2 + $0x379] sm:$0xff] %v459_v24 }
  0xcd   : > { %589 = vst [vmem:[#allocation2 + $0x381] sm:$0xff] %v460_v25  ;;  %590 = vst [vmem:[#allocation2 + $0x389] sm:$0xff] %v461_v26 }
  0xce   : > { %591 = vst [vmem:[#allocation2 + $0x399] sm:$0xff] %v462_v27  ;;  %592 = vst [vmem:[#allocation2 + $0x3a1] sm:$0xff] %v463_v28 }
  0xcf   : > { %593 = vst [vmem:[#allocation2 + $0x3a9] sm:$0xff] %v464_v29  ;;  %594 = vst [vmem:[#allocation2 + $0x3b1] sm:$0xff] %v465_v30 }
  0xd0   : > { %595 = vst [vmem:[#allocation2 + $0x3c1] sm:$0xff] %v466_v31  ;;  %596 = vst [vmem:[#allocation2 + $0x3c9] sm:$0xff] %v467_v32 }
  0xd1   : > { %597 = vst [vmem:[#allocation2 + $0x3d1] sm:$0xff] %v468_v33  ;;  %598 = vst [vmem:[#allocation2 + $0x3d9] sm:$0xff] %v469_v34 }
  0xd2   : > { %599 = vst [vmem:[#allocation2 + $0x3e9] sm:$0xff] %v470_v35  ;;  %600 = vst [vmem:[#allocation2 + $0x3f1] sm:$0xff] %v471_v36 }
  0xd3   : > { %601 = vst [vmem:[#allocation2 + $0x3f9] sm:$0xff] %v472_v37  ;;  %602 = vst [vmem:[#allocation2 + $0x401] sm:$0xff] %v473_v38 }
  0xd4   : > { %603 = vst [vmem:[#allocation2 + $0x411] sm:$0xff] %v474_v39  ;;  %604 = vst [vmem:[#allocation2 + $0x419] sm:$0xff] %v475_v40 }
  0xd5   : > { %605 = vst [vmem:[#allocation2 + $0x421] sm:$0xff] %v476_v41  ;;  %606 = vst [vmem:[#allocation2 + $0x429] sm:$0xff] %v477_v42 }
  0xd6   : > { %607 = vst [vmem:[#allocation2 + $0x439] sm:$0xff] %v478_v43  ;;  %608 = vst [vmem:[#allocation2 + $0x441] sm:$0xff] %v479_v44 }
  0xd7   : > { %609 = vst [vmem:[#allocation2 + $0x449] sm:$0xff] %v480_v45  ;;  %610 = vst [vmem:[#allocation2 + $0x451] sm:$0xff] %v481_v46 }
  0xd8   : > { %611 = vst [vmem:[#allocation2 + $0x461] sm:$0xff] %v482_v47  ;;  %612 = vst [vmem:[#allocation2 + $0x469] sm:$0xff] %v483_v48 }
  0xd9   : > { %613 = vst [vmem:[#allocation2 + $0x471] sm:$0xff] %v484_v49  ;;  %614 = vst [vmem:[#allocation2 + $0x479] sm:$0xff] %v485_v50 }
  0xda   : > { %615 = vst [vmem:[#allocation2 + $0x489] sm:$0xff] %v486_v51  ;;  %616 = vst [vmem:[#allocation2 + $0x491] sm:$0xff] %v487_v52 }
  0xdb   : > { %617 = vst [vmem:[#allocation2 + $0x499] sm:$0xff] %v488_v53  ;;  %618 = vst [vmem:[#allocation2 + $0x4a1] sm:$0xff] %v489_v54 }
  0xdc   : > { %619 = vst [vmem:[#allocation2 + $0x4b1] sm:$0xff] %v490_v55  ;;  %620 = vst [vmem:[#allocation2 + $0x4b9] sm:$0xff] %v491_v56 }
  0xdd   : > { %621 = vst [vmem:[#allocation2 + $0x4c1] sm:$0xff] %v492_v57  ;;  %622 = vst [vmem:[#allocation2 + $0x4c9] sm:$0xff] %v493_v58 }
  0xde   : > { %623 = vst [vmem:[#allocation2 + $0x4d9] sm:$0xff] %v494_v59  ;;  %624 = vst [vmem:[#allocation2 + $0x4e1] sm:$0xff] %v495_v60 }
  0xdf   : > { %625 = vst [vmem:[#allocation2 + $0x4e9] sm:$0xff] %v496_v61  ;;  %626 = vst [vmem:[#allocation2 + $0x4f1] sm:$0xff] %v497_v62 }
  0xe0   : > { %627 = vst [vmem:[#allocation2 + $0x501] sm:$0xff] %v498_v63  ;;  %628 = vst [vmem:[#allocation2 + $0x509] sm:$0xff] %v499_v0 }
  0xe1   : > { %629 = vst [vmem:[#allocation2 + $0x511] sm:$0xff] %v500_v2  ;;  %630 = vst [vmem:[#allocation2 + $0x519] sm:$0xff] %v501_v3 }
  0xe2 LB: >> { %v705_v4 = vld [vmem:[#allocation7 + $0xf8] sm:$0xff]  ;;  %v704_v6 = vld [vmem:[#allocation7 + $0xf0] sm:$0xff]  ;;  %v703_v8 = vld [vmem:[#allocation7 + $0xe8] sm:$0xff]  ;;  %s2542_s17 = smul.u32 160, %s3677_s29  ;;  %s2651_s25 = sshll.u32 %s3677_s29, 7  ;;  %s3677_s29 = sphi %s4152_s29, %s637_s29  }
  0xe3   : >> { %v672_v5 = vld [vmem:[#allocation7 + $0x78] sm:$0xff]  ;;  %2941 = vmatprep.subr.mxu0 %v705_v4  ;;  %v671_v7 = vld [vmem:[#allocation7 + $0x70] sm:$0xff]  ;;  %v670_v9 = vld [vmem:[#allocation7 + $0x68] sm:$0xff]  ;;  %s4587_s4 = scalar_lea.vmem %s4150_s28, %s2651_s25 [#allocation9]  ;;  %s637_s29 = sadd.s32 1, %s3677_s29  }
  0xe4   : >> { %2997 = vmatprep.subr.mxu1 %v672_v5  ;;  %2942 = vmatpush3.msra.mxu0 %v705_v4  ;;  %v702_v10 = vld [vmem:[#allocation7 + $0xe0] sm:$0xff]  ;;  %v701_v12 = vld [vmem:[#allocation7 + $0xd8] sm:$0xff]  ;;  %v700_v14 = vld [vmem:[#allocation7 + $0xd0] sm:$0xff]  ;;  %s4158_s22 = scalar_lea.vmem [#allocation2], %s2542_s17  ;;  %p634_p3 = scmp.ge.s32.totalorder %s637_s29, 8  }
  0xe5   : >> { %2998 = vmatpush3.msra.mxu1 %v672_v5  ;;  %2943 = vmatprep.subr.mxu0 %v704_v6  ;;  %v669_v11 = vld [vmem:[#allocation7 + $0x60] sm:$0xff]  ;;  %v668_v13 = vld [vmem:[#allocation7 + $0x58] sm:$0xff]  ;;  %v667_v15 = vld [vmem:[#allocation7 + $0x50] sm:$0xff]  ;;  %s2652_s8 = sshll.u32 (%p634_p3), %s3728_s16, 14  ;;  %s2430_s11 = sshll.u32 (%p634_p3), %s4150_s28, 4  ;;  %s4635_s11 = int_to_ptr.vmem [resolvable:$true] %s2430_s11 }
  0xe6   : >> { %2999 = vmatprep.subr.mxu1 %v671_v7  ;;  %2944 = vmatpush3.msra.mxu0 %v704_v6  ;;  %v699_v16 = vld [vmem:[#allocation7 + $0xc8] sm:$0xff]  ;;  %v698_v18 = vld [vmem:[#allocation7 + $0xc0] sm:$0xff]  ;;  %v697_v20 = vld [vmem:[#allocation7 + $0xb8] sm:$0xff]  ;;  %s4632_s10 = scalar_lea.hbm (%p634_p3), %s4681_s3, %s2652_s8  ;;  %s2417_s21 = scalar_lea.sflag (%p634_p3), [#allocation6], %s3829_s26 }
  0xe7   : >> { %3000 = vmatpush3.msra.mxu1 %v671_v7  ;;  %2945 = vmatprep.subr.mxu0 %v703_v8  ;;  %v666_v17 = vld [vmem:[#allocation7 + $0x48] sm:$0xff]  ;;  %v665_v19 = vld [vmem:[#allocation7 + $0x40] sm:$0xff]  ;;  %v664_v21 = vld [vmem:[#allocation7 + $0x38] sm:$0xff]  ;;  %s3601_s27 = scalar_lea.vmem (%p634_p3), %s4635_s11, 16384  ;;  %p4738_p7 = scmp.ne.s32.totalorder (%p634_p3), %s4692_s6, 0 }
  0xe8   : >> { %3001 = vmatprep.subr.mxu1 %v670_v9  ;;  %2946 = vmatpush3.msra.mxu0 %v703_v8  ;;  %v696_v22 = vld [vmem:[#allocation7 + $0xb0] sm:$0xff]  ;;  %v695_v24 = vld [vmem:[#allocation7 + $0xa8] sm:$0xff]  ;;  %v694_v26 = vld [vmem:[#allocation7 + $0xa0] sm:$0xff]  ;;  %p3602_p11 = scmp.ne.s32.totalorder (%p634_p3), %s4635_s11, %s3601_s27  ;;  %s3684_s30 = smov (%p634_p3), [#allocation9]  }
  0xe9   : >> { %3002 = vmatpush3.msra.mxu1 %v670_v9  ;;  %2947 = vmatprep.subr.mxu0 %v702_v10  ;;  %v663_v23 = vld [vmem:[#allocation7 + $0x30] sm:$0xff]  ;;  %v662_v25 = vld [vmem:[#allocation7 + $0x28] sm:$0xff]  ;;  %v661_v27 = vld [vmem:[#allocation7 + $0x20] sm:$0xff]  ;;  %s3605_s23 = sshll.u32 (%p634_p3), %s3684_s30, 4  ;;  %s3606_s23 = int_to_ptr.vmem [resolvable:$false] %s3605_s23 }
  0xea   : >> { %3003 = vmatprep.subr.mxu1 %v669_v11  ;;  %2948 = vmatpush3.msra.mxu0 %v702_v10  ;;  %v693_v28 = vld [vmem:[#allocation7 + $0x98] sm:$0xff]  ;;  %v692_v30 = vld [vmem:[#allocation7 + $0x90] sm:$0xff]  ;;  %v691_v32 = vld [vmem:[#allocation7 + $0x88] sm:$0xff]  ;;  %p3603_p9 = pnand (%p634_p3), %p3602_p11, %p4738_p7  ;;  %s3607_s16 = scalar_lea.vmem (%p634_p3), %s3606_s23, 32768 }
  0xeb   : >> { %3004 = vmatpush3.msra.mxu1 %v669_v11  ;;  %2949 = vmatprep.subr.mxu0 %v701_v12  ;;  %v660_v29 = vld [vmem:[#allocation7 + $0x18] sm:$0xff]  ;;  %v659_v31 = vld [vmem:[#allocation7 + $0x10] sm:$0xff]  ;;  %v658_v33 = vld [vmem:[#allocation7 + $0x8] sm:$0xff]  ;;  %p3608_p12 = scmp.lt.s32.totalorder (%p634_p3), %s4635_s11, %s3606_s23  ;;  %p3609_p13 = scmp.lt.s32.totalorder (%p634_p3), %s3607_s16, %s3601_s27 }
  0xec   : >> { %3005 = vmatprep.subr.mxu1 %v668_v13  ;;  %2950 = vmatpush3.msra.mxu0 %v701_v12  ;;  %v690_v34 = vld [vmem:[#allocation7 + $0x80] sm:$0xff]  ;;  %v673_v36 = vld [vmem:[%s4158_s22 + $0x1] sm:$0xff]  ;;  %v676_v46 = vld [vmem:[%s4158_s22 + $0x19] sm:$0xff]  ;;  %p3604_p10 = pneg (%p634_p3), %p3603_p9 }
  0xed   : >> { %3006 = vmatpush3.msra.mxu1 %v668_v13  ;;  %2951 = vmatprep.subr.mxu0 %v700_v14  ;;  %v657_v35 = vld [vmem:[#allocation7] sm:$0xff]  ;;  %v641_v37 = vld [vmem:[%s4158_s22] sm:$0xff]  ;;  %v642_v39 = vld [vmem:[%s4158_s22 + $0x8] sm:$0xff]  ;;  %p3610_p0 = por (%p634_p3), %p3609_p13, %p3608_p12 }
  0xee   : >> { %3007 = vmatprep.subr.mxu1 %v667_v15  ;;  %2952 = vmatpush3.msra.mxu0 %v700_v14  ;;  %v674_v38 = vld [vmem:[%s4158_s22 + $0x9] sm:$0xff]  ;;  %v1027_v42 = vld [vmem:[#allocation7 + $0x170] sm:$0xff]  ;;  %v675_v44 = vld [vmem:[%s4158_s22 + $0x11] sm:$0xff] }
  0xef   : >> { %3008 = vmatpush3.msra.mxu1 %v667_v15  ;;  %2953 = vmatprep.subr.mxu0 %v699_v16  ;;  %v1028_v40 = vld [vmem:[#allocation7 + $0x178] sm:$0xff]  ;;  %v1224_v43 = vld [vmem:[#allocation7 + $0x1f0] sm:$0xff]  ;;  %v643_v45 = vld [vmem:[%s4158_s22 + $0x10] sm:$0xff]  ;;  %p3611_p5 = pnand (%p634_p3), %p3610_p0, %p3604_p10 }
  0xf0   : >> { %3009 = vmatprep.subr.mxu1 %v666_v17  ;;  %2954 = vmatpush3.msra.mxu0 %v699_v16  ;;  %v1225_v41 = vld [vmem:[#allocation7 + $0x1f8] sm:$0xff]  ;;  %v644_v47 = vld [vmem:[%s4158_s22 + $0x18] sm:$0xff]  ;;  %v1025_v50 = vld [vmem:[#allocation7 + $0x160] sm:$0xff] }
  0xf1   : >> { %3010 = vmatpush3.msra.mxu1 %v666_v17  ;;  %2955 = vmatprep.subr.mxu0 %v698_v18  ;;  %v1026_v48 = vld [vmem:[#allocation7 + $0x168] sm:$0xff]  ;;  %v1222_v51 = vld [vmem:[#allocation7 + $0x1e0] sm:$0xff]  ;;  %v4172_v53 = vld [vmem:[%s4158_s22 + $0x28] sm:$0xff] }
  0xf2   : >> { %3011 = vmatprep.subr.mxu1 %v665_v19  ;;  %2956 = vmatpush3.msra.mxu0 %v698_v18  ;;  %v1223_v49 = vld [vmem:[#allocation7 + $0x1e8] sm:$0xff]  ;;  %v4169_v52 = vld [vmem:[%s4158_s22 + $0x29] sm:$0xff]  ;;  %v1023_v58 = vld [vmem:[#allocation7 + $0x150] sm:$0xff] }
  0xf3   : >> { %3012 = vmatpush3.msra.mxu1 %v665_v19  ;;  %2957 = vmatprep.subr.mxu0 %v697_v20  ;;  %v4175_v54 = vld [vmem:[%s4158_s22 + $0x31] sm:$0xff]  ;;  %v1024_v56 = vld [vmem:[#allocation7 + $0x158] sm:$0xff]  ;;  %v1220_v59 = vld [vmem:[#allocation7 + $0x1d0] sm:$0xff] }
  0xf4   : >> { %3013 = vmatprep.subr.mxu1 %v664_v21  ;;  %2958 = vmatpush3.msra.mxu0 %v697_v20  ;;  %v4178_v55 = vld [vmem:[%s4158_s22 + $0x30] sm:$0xff]  ;;  %v1221_v57 = vld [vmem:[#allocation7 + $0x1d8] sm:$0xff]  ;;  %v4185_v60 = vld [vmem:[%s4158_s22 + $0x39] sm:$0xff] }
  0xf5   : >> { %3014 = vmatpush3.msra.mxu1 %v664_v21  ;;  %2959 = vmatprep.subr.mxu0 %v696_v22  ;;  %v4188_v61 = vld [vmem:[%s4158_s22 + $0x38] sm:$0xff]  ;;  %v4191_v62 = vld [vmem:[%s4158_s22 + $0x41] sm:$0xff]  ;;  %v1021_v3 = vld [vmem:[#allocation7 + $0x140] sm:$0xff] }
  0xf6   : >> { %3015 = vmatprep.subr.mxu1 %v663_v23  ;;  %2960 = vmatpush3.msra.mxu0 %v696_v22  ;;  %v4194_v63 = vld [vmem:[%s4158_s22 + $0x40] sm:$0xff]  ;;  %v1022_v0 = vld [vmem:[#allocation7 + $0x148] sm:$0xff]  ;;  %v1218_v4 = vld [vmem:[#allocation7 + $0x1c0] sm:$0xff] }
  0xf7   : >> { %3016 = vmatpush3.msra.mxu1 %v663_v23  ;;  %2961 = vmatprep.subr.mxu0 %v695_v24  ;;  %v1219_v2 = vld [vmem:[#allocation7 + $0x1c8] sm:$0xff]  ;;  %v4204_v6 = vld [vmem:[%s4158_s22 + $0x50] sm:$0xff]  ;;  %v1020_v9 = vld [vmem:[#allocation7 + $0x138] sm:$0xff] }
  0xf8   : >> { %3017 = vmatprep.subr.mxu1 %v662_v25  ;;  %2962 = vmatpush3.msra.mxu0 %v695_v24  ;;  %v4201_v5 = vld [vmem:[%s4158_s22 + $0x51] sm:$0xff]  ;;  %v4207_v7 = vld [vmem:[%s4158_s22 + $0x59] sm:$0xff]  ;;  %v1217_v10 = vld [vmem:[#allocation7 + $0x1b8] sm:$0xff] }
  0xf9   : >> { %3018 = vmatpush3.msra.mxu1 %v662_v25  ;;  %2963 = vmatprep.subr.mxu0 %v694_v26  ;;  %v4210_v8 = vld [vmem:[%s4158_s22 + $0x58] sm:$0xff]  ;;  %v1019_v11 = vld [vmem:[#allocation7 + $0x130] sm:$0xff]  ;;  %v4223_v15 = vld [vmem:[%s4158_s22 + $0x69] sm:$0xff] }
  0xfa   : >> { %3019 = vmatprep.subr.mxu1 %v661_v27  ;;  %2964 = vmatpush3.msra.mxu0 %v694_v26  ;;  %v1216_v12 = vld [vmem:[#allocation7 + $0x1b0] sm:$0xff]  ;;  %v4226_v16 = vld [vmem:[%s4158_s22 + $0x68] sm:$0xff]  ;;  %v1018_v17 = vld [vmem:[#allocation7 + $0x128] sm:$0xff] }
  0xfb   : >> { %3020 = vmatpush3.msra.mxu1 %v661_v27  ;;  %2965 = vmatprep.subr.mxu0 %v693_v28  ;;  %v4217_v13 = vld [vmem:[%s4158_s22 + $0x61] sm:$0xff]  ;;  %v1215_v18 = vld [vmem:[#allocation7 + $0x1a8] sm:$0xff]  ;;  %v1017_v19 = vld [vmem:[#allocation7 + $0x120] sm:$0xff] }
  0xfc   : >> { %3021 = vmatprep.subr.mxu1 %v660_v29  ;;  %2966 = vmatpush3.msra.mxu0 %v693_v28  ;;  %v4220_v14 = vld [vmem:[%s4158_s22 + $0x60] sm:$0xff]  ;;  %v1214_v20 = vld [vmem:[#allocation7 + $0x1a0] sm:$0xff]  ;;  %v4236_v22 = vld [vmem:[%s4158_s22 + $0x78] sm:$0xff] }
  0xfd   : >> { %3022 = vmatpush3.msra.mxu1 %v660_v29  ;;  %2967 = vmatprep.subr.mxu0 %v692_v30  ;;  %v4233_v21 = vld [vmem:[%s4158_s22 + $0x79] sm:$0xff]  ;;  %v4239_v23 = vld [vmem:[%s4158_s22 + $0x81] sm:$0xff]  ;;  %v4249_v29 = vld [vmem:[%s4158_s22 + $0x89] sm:$0xff] }
  0xfe   : >> { %3023 = vmatprep.subr.mxu1 %v659_v31  ;;  %2968 = vmatpush3.msra.mxu0 %v692_v30  ;;  %v4242_v24 = vld [vmem:[%s4158_s22 + $0x80] sm:$0xff]  ;;  %v1016_v25 = vld [vmem:[#allocation7 + $0x118] sm:$0xff] }
  0xff   : >> { %3024 = vmatpush3.msra.mxu1 %v659_v31  ;;  %2969 = vmatprep.subr.mxu0 %v691_v32  ;;  %v1213_v26 = vld [vmem:[#allocation7 + $0x198] sm:$0xff]  ;;  %v1015_v27 = vld [vmem:[#allocation7 + $0x110] sm:$0xff]  ;;  %v4255_v31 = vld [vmem:[%s4158_s22 + $0x91] sm:$0xff] }
 0x100   : >> { %3025 = vmatprep.subr.mxu1 %v658_v33  ;;  %2970 = vmatpush3.msra.mxu0 %v691_v32  ;;  %v1212_v28 = vld [vmem:[#allocation7 + $0x190] sm:$0xff]  ;;  %v4252_v30 = vld [vmem:[%s4158_s22 + $0x88] sm:$0xff]  ;;  %v4258_v32 = vld [vmem:[%s4158_s22 + $0x90] sm:$0xff] }
 0x101   : >> { %3026 = vmatpush3.msra.mxu1 %v658_v33  ;;  %2971 = vmatprep.subr.mxu0 %v690_v34  ;;  %v1014_v33 = vld [vmem:[#allocation7 + $0x108] sm:$0xff] }
 0x102   : >> { %3027 = vmatprep.subr.mxu1 %v657_v35  ;;  %2972 = vmatpush3.msra.mxu0 %v690_v34  ;;  %v1211_v34 = vld [vmem:[#allocation7 + $0x188] sm:$0xff] }
 0x103   : >> { %2973 = vmatprep.mubr.f32.mxu0 %v673_v36  ;;  %3028 = vmatpush3.msra.mxu1 %v657_v35  ;;  %v1013_v35 = vld [vmem:[#allocation7 + $0x100] sm:$0xff] }
 0x104   : >> { %3029 = vmatprep.mubr.f32.mxu1 %v641_v37  ;;  %2974 = vmatmul.mubr.f32.vlgmr.msra.gmra.mxu0 %v674_v38  ;;  %v1210_v36 = vld [vmem:[#allocation7 + $0x180] sm:$0xff]  ;;  %v996_v37 = vld [vmem:[%s4158_s22 + $0x2] sm:$0xff] }
 0x105   : >> { %3030 = vmatmul.mubr.f32.vlgmr.msra.gmra.mxu1 %v642_v39  ;;  %3053 = vmatprep.subr.mxu0 %v1028_v40  ;;  %v997_v38 = vld [vmem:[%s4158_s22 + $0xa] sm:$0xff] }
 0x106   : >> { %3109 = vmatprep.subr.mxu1 %v1225_v41  ;;  %3054 = vmatpush3.msra.mxu0 %v1028_v40  ;;  %v1419_v39 = vld [vmem:[#allocation7 + $0x278] sm:$0xff] }
 0x107   : >> { %3110 = vmatpush3.msra.mxu1 %v1225_v41  ;;  %3055 = vmatprep.subr.mxu0 %v1027_v42  ;;  %v1613_v40 = vld [vmem:[#allocation7 + $0x2f8] sm:$0xff]  ;;  %v1418_v41 = vld [vmem:[#allocation7 + $0x270] sm:$0xff] }
 0x108   : >> { %3111 = vmatprep.subr.mxu1 %v1224_v43  ;;  %2976 = vmatprep.mubr.f32.mxu0 %v675_v44  ;;  %v999_v44 = vld [vmem:[%s4158_s22 + $0x1a] sm:$0xff] }
 0x109   : >> { %3032 = vmatprep.mubr.f32.mxu1 %v643_v45  ;;  %3056 = vmatpush3.msra.mxu0 %v1027_v42  ;;  %v1612_v42 = vld [vmem:[#allocation7 + $0x2f0] sm:$0xff]  ;;  %v1417_v45 = vld [vmem:[#allocation7 + $0x268] sm:$0xff] }
 0x10a   : >> { %3112 = vmatpush3.msra.mxu1 %v1224_v43  ;;  %2977 = vmatmul.mubr.f32.gmra.mxu0 %v676_v46  ;;  %v998_v43 = vld [vmem:[%s4158_s22 + $0x12] sm:$0xff] }
 0x10b   : >> { %3033 = vmatmul.mubr.f32.gmra.mxu1 %v644_v47  ;;  %3057 = vmatprep.subr.mxu0 %v1026_v48  ;;  %v1611_v46 = vld [vmem:[#allocation7 + $0x2e8] sm:$0xff]  ;;  %v1416_v47 = vld [vmem:[#allocation7 + $0x260] sm:$0xff] }
 0x10c   : >> { %3113 = vmatprep.subr.mxu1 %v1223_v49  ;;  %3058 = vmatpush3.msra.mxu0 %v1026_v48  ;;  %v1610_v48 = vld [vmem:[#allocation7 + $0x2e0] sm:$0xff] }
 0x10d   : >> { %3114 = vmatpush3.msra.mxu1 %v1223_v49  ;;  %3059 = vmatprep.subr.mxu0 %v1025_v50  ;;  %v4273_v49 = vld [vmem:[%s4158_s22 + $0x2a] sm:$0xff] }
 0x10e   : >> { %3115 = vmatprep.subr.mxu1 %v1222_v51  ;;  %2979 = vmatprep.mubr.f32.mxu0 %v4169_v52 }
 0x10f   : >> { %3035 = vmatprep.mubr.f32.mxu1 %v4172_v53  ;;  %3060 = vmatpush3.msra.mxu0 %v1025_v50  ;;  %v4276_v50 = vld [vmem:[%s4158_s22 + $0x32] sm:$0xff] }
 0x110   : >> { %3116 = vmatpush3.msra.mxu1 %v1222_v51  ;;  %2980 = vmatmul.mubr.f32.gmra.mxu0 %v4175_v54  ;;  %v1415_v51 = vld [vmem:[#allocation7 + $0x258] sm:$0xff] }
 0x111   : >> { %3036 = vmatmul.mubr.f32.gmra.mxu1 %v4178_v55  ;;  %3061 = vmatprep.subr.mxu0 %v1024_v56 }
 0x112   : >> { %3117 = vmatprep.subr.mxu1 %v1221_v57  ;;  %3062 = vmatpush3.msra.mxu0 %v1024_v56  ;;  %v1608_v56 = vld [vmem:[#allocation7 + $0x2d0] sm:$0xff] }
 0x113   : >> { %3118 = vmatpush3.msra.mxu1 %v1221_v57  ;;  %3063 = vmatprep.subr.mxu0 %v1023_v58  ;;  %v4283_v57 = vld [vmem:[%s4158_s22 + $0x3a] sm:$0xff] }
 0x114   : >> { %3119 = vmatprep.subr.mxu1 %v1220_v59  ;;  %2982 = vmatprep.mubr.f32.mxu0 %v4185_v60 }
 0x115   : >> { %3038 = vmatprep.mubr.f32.mxu1 %v4188_v61  ;;  %3064 = vmatpush3.msra.mxu0 %v1023_v58  ;;  %v4286_v58 = vld [vmem:[%s4158_s22 + $0x42] sm:$0xff] }
 0x116   : >> { %3120 = vmatpush3.msra.mxu1 %v1220_v59  ;;  %2983 = vmatmul.mubr.f32.gmra.mxu0 %v4191_v62  ;;  %v1413_v59 = vld [vmem:[#allocation7 + $0x248] sm:$0xff] }
 0x117   : >> { %3039 = vmatmul.mubr.f32.gmra.mxu1 %v4194_v63  ;;  %3065 = vmatprep.subr.mxu0 %v1022_v0 }
 0x118   : >> { %3121 = vmatprep.subr.mxu1 %v1219_v2  ;;  %3066 = vmatpush3.msra.mxu0 %v1022_v0  ;;  %v1606_v0 = vld [vmem:[#allocation7 + $0x2c0] sm:$0xff] }
 0x119   : >> { %3122 = vmatpush3.msra.mxu1 %v1219_v2  ;;  %3067 = vmatprep.subr.mxu0 %v1021_v3  ;;  %v4293_v2 = vld [vmem:[%s4158_s22 + $0x52] sm:$0xff] }
 0x11a   : >> { %3123 = vmatprep.subr.mxu1 %v1218_v4  ;;  %2985 = vmatprep.mubr.f32.mxu0 %v4201_v5 }
 0x11b   : >> { %3041 = vmatprep.mubr.f32.mxu1 %v4204_v6  ;;  %3068 = vmatpush3.msra.mxu0 %v1021_v3  ;;  %v4296_v3 = vld [vmem:[%s4158_s22 + $0x5a] sm:$0xff] }
 0x11c   : >> { %3124 = vmatpush3.msra.mxu1 %v1218_v4  ;;  %2986 = vmatmul.mubr.f32.gmra.mxu0 %v4207_v7  ;;  %v1411_v4 = vld [vmem:[#allocation7 + $0x238] sm:$0xff] }
 0x11d   : >> { %3042 = vmatmul.mubr.f32.gmra.mxu1 %v4210_v8  ;;  %3069 = vmatprep.subr.mxu0 %v1020_v9 }
 0x11e   : >> { %3125 = vmatprep.subr.mxu1 %v1217_v10  ;;  %3070 = vmatpush3.msra.mxu0 %v1020_v9  ;;  %v1605_v9 = vld [vmem:[#allocation7 + $0x2b8] sm:$0xff] }
 0x11f   : >> { %3126 = vmatpush3.msra.mxu1 %v1217_v10  ;;  %3071 = vmatprep.subr.mxu0 %v1019_v11  ;;  %v1410_v10 = vld [vmem:[#allocation7 + $0x230] sm:$0xff] }
 0x120   : >> { %3127 = vmatprep.subr.mxu1 %v1216_v12  ;;  %2988 = vmatprep.mubr.f32.mxu0 %v4217_v13 }
 0x121   : >> { %3044 = vmatprep.mubr.f32.mxu1 %v4220_v14  ;;  %3072 = vmatpush3.msra.mxu0 %v1019_v11  ;;  %v1604_v11 = vld [vmem:[#allocation7 + $0x2b0] sm:$0xff] }
 0x122   : >> { %3128 = vmatpush3.msra.mxu1 %v1216_v12  ;;  %2989 = vmatmul.mubr.f32.gmra.mxu0 %v4223_v15  ;;  %v4303_v12 = vld [vmem:[%s4158_s22 + $0x62] sm:$0xff] }
 0x123   : >> { %3045 = vmatmul.mubr.f32.gmra.mxu1 %v4226_v16  ;;  %3073 = vmatprep.subr.mxu0 %v1018_v17 }
 0x124   : >> { %3129 = vmatprep.subr.mxu1 %v1215_v18  ;;  %3074 = vmatpush3.msra.mxu0 %v1018_v17  ;;  %v4306_v17 = vld [vmem:[%s4158_s22 + $0x6a] sm:$0xff] }
 0x125   : >> { %3130 = vmatpush3.msra.mxu1 %v1215_v18  ;;  %3075 = vmatprep.subr.mxu0 %v1017_v19  ;;  %v1409_v18 = vld [vmem:[#allocation7 + $0x228] sm:$0xff] }
 0x126   : >> { %3131 = vmatprep.subr.mxu1 %v1214_v20  ;;  %2991 = vmatprep.mubr.f32.mxu0 %v4233_v21 }
 0x127   : >> { %3047 = vmatprep.mubr.f32.mxu1 %v4236_v22  ;;  %3076 = vmatpush3.msra.mxu0 %v1017_v19  ;;  %v1603_v19 = vld [vmem:[#allocation7 + $0x2a8] sm:$0xff] }
 0x128   : >> { %3132 = vmatpush3.msra.mxu1 %v1214_v20  ;;  %2992 = vmatmul.mubr.f32.gmra.mxu0 %v4239_v23  ;;  %v1408_v20 = vld [vmem:[#allocation7 + $0x220] sm:$0xff] }
 0x129   : >> { %3048 = vmatmul.mubr.f32.gmra.mxu1 %v4242_v24  ;;  %3077 = vmatprep.subr.mxu0 %v1016_v25 }
 0x12a   : >> { %3133 = vmatprep.subr.mxu1 %v1213_v26  ;;  %3078 = vmatpush3.msra.mxu0 %v1016_v25  ;;  %v1602_v25 = vld [vmem:[#allocation7 + $0x2a0] sm:$0xff] }
 0x12b   : >> { %3134 = vmatpush3.msra.mxu1 %v1213_v26  ;;  %3079 = vmatprep.subr.mxu0 %v1015_v27  ;;  %v4313_v26 = vld [vmem:[%s4158_s22 + $0x7a] sm:$0xff] }
 0x12c   : >> { %3135 = vmatprep.subr.mxu1 %v1212_v28  ;;  %2994 = vmatprep.mubr.f32.mxu0 %v4249_v29 }
 0x12d   : >> { %3050 = vmatprep.mubr.f32.mxu1 %v4252_v30  ;;  %3080 = vmatpush3.msra.mxu0 %v1015_v27  ;;  %v4316_v27 = vld [vmem:[%s4158_s22 + $0xa0] sm:$0xff] }
 0x12e   : >> { %3136 = vmatpush3.msra.mxu1 %v1212_v28  ;;  %2995 = vmatmul.mubr.f32.gmra.mxu0 %v4255_v31  ;;  %v4319_v28 = vld [vmem:[%s4158_s22 + $0x82] sm:$0xff] }
 0x12f   : >> { %3051 = vmatmul.mubr.f32.gmra.mxu1 %v4258_v32  ;;  %3081 = vmatprep.subr.mxu0 %v1014_v33 }
 0x130   : >> { %3137 = vmatprep.subr.mxu1 %v1211_v34  ;;  %3082 = vmatpush3.msra.mxu0 %v1014_v33  ;;  %v4322_v33 = vld [vmem:[%s4158_s22 + $0xa8] sm:$0xff] }
 0x131   : >> { %3138 = vmatpush3.msra.mxu1 %v1211_v34  ;;  %3083 = vmatprep.subr.mxu0 %v1013_v35  ;;  %v1407_v34 = vld [vmem:[#allocation7 + $0x218] sm:$0xff] }
 0x132   : >> { %3139 = vmatprep.subr.mxu1 %v1210_v36  ;;  %3084 = vmatpush3.msra.mxu0 %v1013_v35  ;;  %v1601_v35 = vld [vmem:[#allocation7 + $0x298] sm:$0xff] }
 0x133   : >> { %3085 = vmatprep.mubr.f32.mxu0 %v996_v37  ;;  %3140 = vmatpush3.msra.mxu1 %v1210_v36  ;;  %v1406_v36 = vld [vmem:[#allocation7 + $0x210] sm:$0xff] }
 0x134   : >> { %3141 = vmatprep.mubr.f32.mxu1 %v4172_v53  ;;  %3086 = vmatmul.mubr.f32.vlgmr.msra.gmra.mxu0 %v997_v38  ;;  %v1609_v53 = vld [vmem:[#allocation7 + $0x2d8] sm:$0xff]  ;;  %v1600_v37 = vld [vmem:[#allocation7 + $0x290] sm:$0xff] }
 0x135   : >> { %3142 = vmatmul.mubr.f32.vlgmr.msra.gmra.mxu1 %v4178_v55  ;;  %3165 = vmatprep.subr.mxu0 %v1419_v39  ;;  %v1414_v55 = vld [vmem:[#allocation7 + $0x250] sm:$0xff]  ;;  %v4329_v38 = vld [vmem:[%s4158_s22 + $0x8a] sm:$0xff] }
 0x136   : >> { %3221 = vmatprep.subr.mxu1 %v1613_v40  ;;  %3166 = vmatpush3.msra.mxu0 %v1419_v39  ;;  %v4332_v39 = vld [vmem:[%s4158_s22 + $0xb0] sm:$0xff] }
 0x137   : >> { %3222 = vmatpush3.msra.mxu1 %v1613_v40  ;;  %3167 = vmatprep.subr.mxu0 %v1418_v41  ;;  %v4335_v40 = vld [vmem:[%s4158_s22 + $0x92] sm:$0xff] }
 0x138   : >> { %3223 = vmatprep.subr.mxu1 %v1612_v42  ;;  %3088 = vmatprep.mubr.f32.mxu0 %v998_v43  ;;  %v1599_v43 = vld [vmem:[#allocation7 + $0x288] sm:$0xff] }
 0x139   : >> { %3144 = vmatprep.mubr.f32.mxu1 %v4188_v61  ;;  %3168 = vmatpush3.msra.mxu0 %v1418_v41  ;;  %v1607_v61 = vld [vmem:[#allocation7 + $0x2c8] sm:$0xff] }
 0x13a   : >> { %3224 = vmatpush3.msra.mxu1 %v1612_v42  ;;  %3089 = vmatmul.mubr.f32.gmra.mxu0 %v999_v44  ;;  %v4338_v41 = vld [vmem:[%s4158_s22 + $0xb8] sm:$0xff]  ;;  %v1404_v44 = vld [vmem:[#allocation7 + $0x200] sm:$0xff] }
 0x13b   : >> { %3145 = vmatmul.mubr.f32.gmra.mxu1 %v4194_v63  ;;  %3169 = vmatprep.subr.mxu0 %v1417_v45  ;;  %v1412_v63 = vld [vmem:[#allocation7 + $0x240] sm:$0xff]  ;;  %v1405_v42 = vld [vmem:[#allocation7 + $0x208] sm:$0xff] }
 0x13c   : >> { %3225 = vmatprep.subr.mxu1 %v1611_v46  ;;  %3170 = vmatpush3.msra.mxu0 %v1417_v45  ;;  %v1598_v45 = vld [vmem:[#allocation7 + $0x280] sm:$0xff] }
 0x13d   : >> { %3226 = vmatpush3.msra.mxu1 %v1611_v46  ;;  %3171 = vmatprep.subr.mxu0 %v1416_v47  ;;  %v1810_v46 = vld [vmem:[#allocation7 + $0x378] sm:$0xff] }
 0x13e   : >> { %3227 = vmatprep.subr.mxu1 %v1610_v48  ;;  %3091 = vmatprep.mubr.f32.mxu0 %v4273_v49 }
 0x13f   : >> { %3147 = vmatprep.mubr.f32.mxu1 %v4204_v6  ;;  %3172 = vmatpush3.msra.mxu0 %v1416_v47  ;;  %v2004_v47 = vld [vmem:[#allocation7 + $0x3f8] sm:$0xff] }
 0x140   : >> { %3228 = vmatpush3.msra.mxu1 %v1610_v48  ;;  %3092 = vmatmul.mubr.f32.gmra.mxu0 %v4276_v50  ;;  %v1809_v48 = vld [vmem:[#allocation7 + $0x370] sm:$0xff] }
 0x141   : >> { %3148 = vmatmul.mubr.f32.gmra.mxu1 %v4210_v8  ;;  %3173 = vmatprep.subr.mxu0 %v1415_v51 }
 0x142   : >> { %3229 = vmatprep.subr.mxu1 %v1609_v53  ;;  %3174 = vmatpush3.msra.mxu0 %v1415_v51  ;;  %v2003_v51 = vld [vmem:[#allocation7 + $0x3f0] sm:$0xff] }
 0x143   : >> { %3230 = vmatpush3.msra.mxu1 %v1609_v53  ;;  %3175 = vmatprep.subr.mxu0 %v1414_v55  ;;  %v2002_v53 = vld [vmem:[#allocation7 + $0x3e8] sm:$0xff] }
 0x144   : >> { %3231 = vmatprep.subr.mxu1 %v1608_v56  ;;  %3094 = vmatprep.mubr.f32.mxu0 %v4283_v57 }
 0x145   : >> { %3150 = vmatprep.mubr.f32.mxu1 %v4220_v14  ;;  %3176 = vmatpush3.msra.mxu0 %v1414_v55  ;;  %v1999_v55 = vld [vmem:[#allocation7 + $0x3d0] sm:$0xff] }
 0x146   : >> { %3232 = vmatpush3.msra.mxu1 %v1608_v56  ;;  %3095 = vmatmul.mubr.f32.gmra.mxu0 %v4286_v58  ;;  %v1804_v56 = vld [vmem:[#allocation7 + $0x348] sm:$0xff] }
 0x147   : >> { %3151 = vmatmul.mubr.f32.gmra.mxu1 %v4226_v16  ;;  %3177 = vmatprep.subr.mxu0 %v1413_v59 }
 0x148   : >> { %3233 = vmatprep.subr.mxu1 %v1607_v61  ;;  %3178 = vmatpush3.msra.mxu0 %v1413_v59  ;;  %v1997_v59 = vld [vmem:[#allocation7 + $0x3c0] sm:$0xff] }
 0x149   : >> { %3234 = vmatpush3.msra.mxu1 %v1607_v61  ;;  %3179 = vmatprep.subr.mxu0 %v1412_v63  ;;  %v1802_v61 = vld [vmem:[#allocation7 + $0x338] sm:$0xff] }
 0x14a   : >> { %3235 = vmatprep.subr.mxu1 %v1606_v0  ;;  %3097 = vmatprep.mubr.f32.mxu0 %v4293_v2 }
 0x14b   : >> { %3153 = vmatprep.mubr.f32.mxu1 %v4236_v22  ;;  %3180 = vmatpush3.msra.mxu0 %v1412_v63  ;;  %v1996_v63 = vld [vmem:[#allocation7 + $0x3b8] sm:$0xff] }
 0x14c   : >> { %3236 = vmatpush3.msra.mxu1 %v1606_v0  ;;  %3098 = vmatmul.mubr.f32.gmra.mxu0 %v4296_v3  ;;  %v1801_v0 = vld [vmem:[#allocation7 + $0x330] sm:$0xff] }
 0x14d   : >> { %3154 = vmatmul.mubr.f32.gmra.mxu1 %v4242_v24  ;;  %3181 = vmatprep.subr.mxu0 %v1411_v4 }
 0x14e   : >> { %3237 = vmatprep.subr.mxu1 %v1605_v9  ;;  %3182 = vmatpush3.msra.mxu0 %v1411_v4  ;;  %v1995_v4 = vld [vmem:[#allocation7 + $0x3b0] sm:$0xff] }
 0x14f   : >> { %3238 = vmatpush3.msra.mxu1 %v1605_v9  ;;  %3183 = vmatprep.subr.mxu0 %v1410_v10  ;;  %v1800_v9 = vld [vmem:[#allocation7 + $0x328] sm:$0xff] }
 0x150   : >> { %3239 = vmatprep.subr.mxu1 %v1604_v11  ;;  %3100 = vmatprep.mubr.f32.mxu0 %v4303_v12 }
 0x151   : >> { %3156 = vmatprep.mubr.f32.mxu1 %v4252_v30  ;;  %3184 = vmatpush3.msra.mxu0 %v1410_v10  ;;  %v1994_v10 = vld [vmem:[#allocation7 + $0x3a8] sm:$0xff] }
 0x152   : >> { %3240 = vmatpush3.msra.mxu1 %v1604_v11  ;;  %3101 = vmatmul.mubr.f32.gmra.mxu0 %v4306_v17  ;;  %v1799_v11 = vld [vmem:[#allocation7 + $0x320] sm:$0xff] }
 0x153   : >> { %3157 = vmatmul.mubr.f32.gmra.mxu1 %v4258_v32  ;;  %3185 = vmatprep.subr.mxu0 %v1409_v18 }
 0x154   : >> { %3241 = vmatprep.subr.mxu1 %v1603_v19  ;;  %3186 = vmatpush3.msra.mxu0 %v1409_v18  ;;  %v1993_v18 = vld [vmem:[#allocation7 + $0x3a0] sm:$0xff] }
 0x155   : >> { %3242 = vmatpush3.msra.mxu1 %v1603_v19  ;;  %3187 = vmatprep.subr.mxu0 %v1408_v20  ;;  %v4369_v19 = vld [vmem:[%s4158_s22 + $0xa1] sm:$0xff] }
 0x156   : >> { %3243 = vmatprep.subr.mxu1 %v1602_v25  ;;  %3103 = vmatprep.mubr.f32.mxu0 %v4313_v26 }
 0x157   : >> { %3159 = vmatprep.mubr.f32.mxu1 %v4316_v27  ;;  %3188 = vmatpush3.msra.mxu0 %v1408_v20  ;;  %v4372_v20 = vld [vmem:[%s4158_s22 + $0xa2] sm:$0xff] }
 0x158   : >> { %3244 = vmatpush3.msra.mxu1 %v1602_v25  ;;  %3104 = vmatmul.mubr.f32.gmra.mxu0 %v4319_v28  ;;  %v4375_v25 = vld [vmem:[%s4158_s22 + $0xa9] sm:$0xff] }
 0x159   : >> { %3160 = vmatmul.mubr.f32.gmra.mxu1 %v4322_v33  ;;  %3189 = vmatprep.subr.mxu0 %v1407_v34 }
 0x15a   : >> { %3245 = vmatprep.subr.mxu1 %v1601_v35  ;;  %3190 = vmatpush3.msra.mxu0 %v1407_v34  ;;  %v4378_v34 = vld [vmem:[%s4158_s22 + $0xaa] sm:$0xff] }
 0x15b   : >> { %3246 = vmatpush3.msra.mxu1 %v1601_v35  ;;  %3191 = vmatprep.subr.mxu0 %v1406_v36  ;;  %v1798_v35 = vld [vmem:[#allocation7 + $0x318] sm:$0xff] }
 0x15c   : >> { %3247 = vmatprep.subr.mxu1 %v1600_v37  ;;  %3106 = vmatprep.mubr.f32.mxu0 %v4329_v38 }
 0x15d   : >> { %3162 = vmatprep.mubr.f32.mxu1 %v4332_v39  ;;  %3192 = vmatpush3.msra.mxu0 %v1406_v36  ;;  %v1992_v36 = vld [vmem:[#allocation7 + $0x398] sm:$0xff] }
 0x15e   : >> { %3248 = vmatpush3.msra.mxu1 %v1600_v37  ;;  %3107 = vmatmul.mubr.f32.gmra.mxu0 %v4335_v40  ;;  %v1797_v37 = vld [vmem:[#allocation7 + $0x310] sm:$0xff] }
 0x15f   : >> { %3163 = vmatmul.mubr.f32.gmra.mxu1 %v4338_v41  ;;  %3193 = vmatprep.subr.mxu0 %v1405_v42 }
 0x160   : >> { %3249 = vmatprep.subr.mxu1 %v1599_v43  ;;  %3194 = vmatpush3.msra.mxu0 %v1405_v42  ;;  %v1991_v42 = vld [vmem:[#allocation7 + $0x390] sm:$0xff] }
 0x161   : >> { %3250 = vmatpush3.msra.mxu1 %v1599_v43  ;;  %3195 = vmatprep.subr.mxu0 %v1404_v44  ;;  %v4385_v43 = vld [vmem:[%s4158_s22 + $0xb1] sm:$0xff] }
 0x162   : >> { %3251 = vmatprep.subr.mxu1 %v1598_v45  ;;  %3196 = vmatpush3.msra.mxu0 %v1404_v44  ;;  %v4388_v44 = vld [vmem:[%s4158_s22 + $0xb2] sm:$0xff] }
 0x163   : >> { %3197 = vmatprep.mubr.f32.mxu0 %v4169_v52  ;;  %3252 = vmatpush3.msra.mxu1 %v1598_v45  ;;  %v1808_v52 = vld [vmem:[#allocation7 + $0x368] sm:$0xff] }
 0x164   : >> { %3253 = vmatprep.mubr.f32.mxu1 %v4273_v49  ;;  %3198 = vmatmul.mubr.f32.vlgmr.msra.gmra.mxu0 %v4175_v54  ;;  %v1807_v54 = vld [vmem:[#allocation7 + $0x360] sm:$0xff]  ;;  %v4391_v45 = vld [vmem:[%s4158_s22 + $0xb9] sm:$0xff] }
 0x165   : >> { %3254 = vmatmul.mubr.f32.vlgmr.msra.gmra.mxu1 %v4276_v50  ;;  %3277 = vmatprep.subr.mxu0 %v1810_v46  ;;  %v2001_v49 = vld [vmem:[#allocation7 + $0x3e0] sm:$0xff]  ;;  %v2000_v50 = vld [vmem:[#allocation7 + $0x3d8] sm:$0xff] }
 0x166   : >> { %3333 = vmatprep.subr.mxu1 %v2004_v47  ;;  %3278 = vmatpush3.msra.mxu0 %v1810_v46  ;;  %v4394_v46 = vld [vmem:[%s4158_s22 + $0xba] sm:$0xff] }
 0x167   : >> { %3334 = vmatpush3.msra.mxu1 %v2004_v47  ;;  %3279 = vmatprep.subr.mxu0 %v1809_v48  ;;  %v1796_v47 = vld [vmem:[#allocation7 + $0x308] sm:$0xff] }
 0x168   : >> { %3335 = vmatprep.subr.mxu1 %v2003_v51  ;;  %3200 = vmatprep.mubr.f32.mxu0 %v4185_v60  ;;  %v1806_v60 = vld [vmem:[#allocation7 + $0x358] sm:$0xff] }
 0x169   : >> { %3256 = vmatprep.mubr.f32.mxu1 %v4283_v57  ;;  %3280 = vmatpush3.msra.mxu0 %v1809_v48  ;;  %v1998_v57 = vld [vmem:[#allocation7 + $0x3c8] sm:$0xff] }
 0x16a   : >> { %3336 = vmatpush3.msra.mxu1 %v2003_v51  ;;  %3201 = vmatmul.mubr.f32.gmra.mxu0 %v4191_v62  ;;  %v1805_v62 = vld [vmem:[#allocation7 + $0x350] sm:$0xff]  ;;  %v1990_v48 = vld [vmem:[#allocation7 + $0x388] sm:$0xff]  ;;  %v1795_v51 = vld [vmem:[#allocation7 + $0x300] sm:$0xff] }
 0x16b   : >> { %3257 = vmatmul.mubr.f32.gmra.mxu1 %v4286_v58  ;;  %3281 = vmatprep.subr.mxu0 %v1808_v52  ;;  %v1803_v58 = vld [vmem:[#allocation7 + $0x340] sm:$0xff] }
 0x16c   : >> { %3337 = vmatprep.subr.mxu1 %v2002_v53  ;;  %3282 = vmatpush3.msra.mxu0 %v1808_v52  ;;  %v1989_v52 = vld [vmem:[#allocation7 + $0x380] sm:$0xff] }
 0x16d   : >> { %3338 = vmatpush3.msra.mxu1 %v2002_v53  ;;  %3283 = vmatprep.subr.mxu0 %v1807_v54  ;;  %v2198_v53 = vld [vmem:[#allocation7 + $0x478] sm:$0xff] }
 0x16e   : >> { %3339 = vmatprep.subr.mxu1 %v2001_v49  ;;  %3203 = vmatprep.mubr.f32.mxu0 %v4201_v5 }
 0x16f   : >> { %3259 = vmatprep.mubr.f32.mxu1 %v4293_v2  ;;  %3284 = vmatpush3.msra.mxu0 %v1807_v54  ;;  %v2197_v54 = vld [vmem:[#allocation7 + $0x470] sm:$0xff] }
 0x170   : >> { %3340 = vmatpush3.msra.mxu1 %v2001_v49  ;;  %3204 = vmatmul.mubr.f32.gmra.mxu0 %v4207_v7  ;;  %v2184_v49 = vld [vmem:[#allocation7 + $0x408] sm:$0xff] }
 0x171   : >> { %3260 = vmatmul.mubr.f32.gmra.mxu1 %v4296_v3  ;;  %3285 = vmatprep.subr.mxu0 %v1806_v60 }
 0x172   : >> { %3341 = vmatprep.subr.mxu1 %v2000_v50  ;;  %3286 = vmatpush3.msra.mxu0 %v1806_v60  ;;  %v2183_v60 = vld [vmem:[#allocation7 + $0x400] sm:$0xff] }
 0x173   : >> { %3342 = vmatpush3.msra.mxu1 %v2000_v50  ;;  %3287 = vmatprep.subr.mxu0 %v1805_v62 }
 0x174   : >> { %3343 = vmatprep.subr.mxu1 %v1999_v55  ;;  %3206 = vmatprep.mubr.f32.mxu0 %v4217_v13 }
 0x175   : >> { %3262 = vmatprep.mubr.f32.mxu1 %v4303_v12  ;;  %3288 = vmatpush3.msra.mxu0 %v1805_v62 }
 0x176   : >> { %3344 = vmatpush3.msra.mxu1 %v1999_v55  ;;  %3207 = vmatmul.mubr.f32.gmra.mxu0 %v4223_v15 }
 0x177   : >> { %3263 = vmatmul.mubr.f32.gmra.mxu1 %v4306_v17  ;;  %3289 = vmatprep.subr.mxu0 %v1804_v56 }
 0x178   : >> { %3345 = vmatprep.subr.mxu1 %v1998_v57  ;;  %3290 = vmatpush3.msra.mxu0 %v1804_v56  ;;  %v2639_v56 = vld [vmem:[%s4158_s22 + $0xca] sm:$0xff] }
 0x179   : >> { %3346 = vmatpush3.msra.mxu1 %v1998_v57  ;;  %3291 = vmatprep.subr.mxu0 %v1803_v58 }
 0x17a   : >> { %3347 = vmatprep.subr.mxu1 %v1997_v59  ;;  %3209 = vmatprep.mubr.f32.mxu0 %v4233_v21 }
 0x17b   : >> { %3265 = vmatprep.mubr.f32.mxu1 %v4313_v26  ;;  %3292 = vmatpush3.msra.mxu0 %v1803_v58 }
 0x17c   : >> { %3348 = vmatpush3.msra.mxu1 %v1997_v59  ;;  %3210 = vmatmul.mubr.f32.gmra.mxu0 %v4239_v23 }
 0x17d   : >> { %3266 = vmatmul.mubr.f32.gmra.mxu1 %v4319_v28  ;;  %3293 = vmatprep.subr.mxu0 %v1802_v61 }
 0x17e   : >> { %3349 = vmatprep.subr.mxu1 %v1996_v63  ;;  %3294 = vmatpush3.msra.mxu0 %v1802_v61 }
 0x17f   : >> { %3350 = vmatpush3.msra.mxu1 %v1996_v63  ;;  %3295 = vmatprep.subr.mxu0 %v1801_v0 }
 0x180   : >> { %3351 = vmatprep.subr.mxu1 %v1995_v4  ;;  %3212 = vmatprep.mubr.f32.mxu0 %v4249_v29 }
 0x181   : >> { %3268 = vmatprep.mubr.f32.mxu1 %v4329_v38  ;;  %3296 = vmatpush3.msra.mxu0 %v1801_v0 }
 0x182   : >> { %3352 = vmatpush3.msra.mxu1 %v1995_v4  ;;  %3213 = vmatmul.mubr.f32.gmra.mxu0 %v4255_v31 }
 0x183   : >> { %3269 = vmatmul.mubr.f32.gmra.mxu1 %v4335_v40  ;;  %3297 = vmatprep.subr.mxu0 %v1800_v9 }
 0x184   : >> { %3353 = vmatprep.subr.mxu1 %v1994_v10  ;;  %3298 = vmatpush3.msra.mxu0 %v1800_v9  ;;  %v2642_v9 = vld [vmem:[%s4158_s22 + $0xe2] sm:$0xff] }
 0x185   : >> { %3354 = vmatpush3.msra.mxu1 %v1994_v10  ;;  %3299 = vmatprep.subr.mxu0 %v1799_v11 }
 0x186   : >> { %3355 = vmatprep.subr.mxu1 %v1993_v18  ;;  %3215 = vmatprep.mubr.f32.mxu0 %v4369_v19 }
 0x187   : >> { %3271 = vmatprep.mubr.f32.mxu1 %v4372_v20  ;;  %3300 = vmatpush3.msra.mxu0 %v1799_v11 }
 0x188   : >> { %3356 = vmatpush3.msra.mxu1 %v1993_v18  ;;  %3216 = vmatmul.mubr.f32.gmra.mxu0 %v4375_v25 }
 0x189   : >> { %3272 = vmatmul.mubr.f32.gmra.mxu1 %v4378_v34  ;;  %3301 = vmatprep.subr.mxu0 %v1798_v35 }
 0x18a   : >> { %3357 = vmatprep.subr.mxu1 %v1992_v36  ;;  %3302 = vmatpush3.msra.mxu0 %v1798_v35 }
 0x18b   : >> { %3358 = vmatpush3.msra.mxu1 %v1992_v36  ;;  %3303 = vmatprep.subr.mxu0 %v1797_v37 }
 0x18c   : >> { %3359 = vmatprep.subr.mxu1 %v1991_v42  ;;  %3218 = vmatprep.mubr.f32.mxu0 %v4385_v43 }
 0x18d   : >> { %3274 = vmatprep.mubr.f32.mxu1 %v4388_v44  ;;  %3304 = vmatpush3.msra.mxu0 %v1797_v37 }
 0x18e   : >> { %3360 = vmatpush3.msra.mxu1 %v1991_v42  ;;  %3219 = vmatmul.mubr.f32.gmra.mxu0 %v4391_v45 }
 0x18f   : >> { %3275 = vmatmul.mubr.f32.gmra.mxu1 %v4394_v46  ;;  %3305 = vmatprep.subr.mxu0 %v1796_v47 }
 0x190   : >> { %3361 = vmatprep.subr.mxu1 %v1990_v48  ;;  %3306 = vmatpush3.msra.mxu0 %v1796_v47 }
 0x191   : >> { %3362 = vmatpush3.msra.mxu1 %v1990_v48  ;;  %3307 = vmatprep.subr.mxu0 %v1795_v51 }
 0x192   : >> { %3363 = vmatprep.subr.mxu1 %v1989_v52  ;;  %3308 = vmatpush3.msra.mxu0 %v1795_v51 }
 0x193   : >> { %3309 = vmatprep.mubr.f32.mxu0 %v4204_v6  ;;  %3364 = vmatpush3.msra.mxu1 %v1989_v52  ;;  %v2196_v6 = vld [vmem:[#allocation7 + $0x468] sm:$0xff] }
 0x194   : >> { %3365 = vmatprep.mubr.f32.mxu1 %v4201_v5  ;;  %3310 = vmatmul.mubr.f32.vlgmr.msra.gmra.mxu0 %v4210_v8  ;;  %v2195_v5 = vld [vmem:[#allocation7 + $0x460] sm:$0xff]  ;;  %v2193_v8 = vld [vmem:[#allocation7 + $0x450] sm:$0xff] }
 0x195   : >> { %3366 = vmatmul.mubr.f32.vlgmr.msra.gmra.mxu1 %v4207_v7  ;;  %3389 = vmatprep.subr.mxu0 %v2198_v53  ;;  %v2194_v7 = vld [vmem:[#allocation7 + $0x458] sm:$0xff] }
 0x196   : >> { %3445 = vmatprep.subr.mxu1 %v2198_v53  ;;  %3390 = vmatpush3.msra.mxu0 %v2198_v53 }
 0x197   : >> { %3461 = vmatpush3.msra.mxu1 %v2198_v53  ;;  %3391 = vmatprep.subr.mxu0 %v2197_v54 }
 0x198   : >> { %3446 = vmatprep.subr.mxu1 %v2197_v54  ;;  %3312 = vmatprep.mubr.f32.mxu0 %v4220_v14  ;;  %v2191_v14 = vld [vmem:[#allocation7 + $0x440] sm:$0xff] }
 0x199   : >> { %3368 = vmatprep.mubr.f32.mxu1 %v4217_v13  ;;  %3392 = vmatpush3.msra.mxu0 %v2197_v54  ;;  %v2192_v13 = vld [vmem:[#allocation7 + $0x448] sm:$0xff] }
 0x19a   : >> { %3462 = vmatpush3.msra.mxu1 %v2197_v54  ;;  %3313 = vmatmul.mubr.f32.gmra.mxu0 %v4226_v16  ;;  %v2189_v16 = vld [vmem:[#allocation7 + $0x430] sm:$0xff] }
 0x19b   : >> { %3369 = vmatmul.mubr.f32.gmra.mxu1 %v4223_v15  ;;  %3393 = vmatprep.subr.mxu0 %v2196_v6  ;;  %v2190_v15 = vld [vmem:[#allocation7 + $0x438] sm:$0xff] }
 0x19c   : >> { %3447 = vmatprep.subr.mxu1 %v2196_v6  ;;  %3394 = vmatpush3.msra.mxu0 %v2196_v6 }
 0x19d   : >> { %3463 = vmatpush3.msra.mxu1 %v2196_v6  ;;  %3395 = vmatprep.subr.mxu0 %v2195_v5 }
 0x19e   : >> { %3448 = vmatprep.subr.mxu1 %v2195_v5  ;;  %3315 = vmatprep.mubr.f32.mxu0 %v4236_v22  ;;  %v2187_v22 = vld [vmem:[#allocation7 + $0x420] sm:$0xff] }
 0x19f   : >> { %3371 = vmatprep.mubr.f32.mxu1 %v4233_v21  ;;  %3396 = vmatpush3.msra.mxu0 %v2195_v5  ;;  %v2188_v21 = vld [vmem:[#allocation7 + $0x428] sm:$0xff] }
 0x1a0   : >> { %3464 = vmatpush3.msra.mxu1 %v2195_v5  ;;  %3316 = vmatmul.mubr.f32.gmra.mxu0 %v4242_v24  ;;  %v2623_v24 = vld [vmem:[%s4158_s22 + $0xc9] sm:$0xff] }
 0x1a1   : >> { %3372 = vmatmul.mubr.f32.gmra.mxu1 %v4239_v23  ;;  %3397 = vmatprep.subr.mxu0 %v2194_v7  ;;  %v2607_v23 = vld [vmem:[%s4158_s22 + $0xc8] sm:$0xff] }
 0x1a2   : >> { %3449 = vmatprep.subr.mxu1 %v2194_v7  ;;  %3398 = vmatpush3.msra.mxu0 %v2194_v7 }
 0x1a3   : >> { %3465 = vmatpush3.msra.mxu1 %v2194_v7  ;;  %3399 = vmatprep.subr.mxu0 %v2193_v8 }
 0x1a4   : >> { %3450 = vmatprep.subr.mxu1 %v2193_v8  ;;  %3318 = vmatprep.mubr.f32.mxu0 %v4252_v30  ;;  %v2624_v30 = vld [vmem:[%s4158_s22 + $0xd1] sm:$0xff] }
 0x1a5   : >> { %3374 = vmatprep.mubr.f32.mxu1 %v4249_v29  ;;  %3400 = vmatpush3.msra.mxu0 %v2193_v8  ;;  %v2608_v29 = vld [vmem:[%s4158_s22 + $0xd0] sm:$0xff] }
 0x1a6   : >> { %3466 = vmatpush3.msra.mxu1 %v2193_v8  ;;  %3319 = vmatmul.mubr.f32.gmra.mxu0 %v4258_v32  ;;  %v2185_v32 = vld [vmem:[#allocation7 + $0x410] sm:$0xff] }
 0x1a7   : >> { %3375 = vmatmul.mubr.f32.gmra.mxu1 %v4255_v31  ;;  %3401 = vmatprep.subr.mxu0 %v2192_v13  ;;  %v2186_v31 = vld [vmem:[#allocation7 + $0x418] sm:$0xff] }
 0x1a8   : >> { %3451 = vmatprep.subr.mxu1 %v2192_v13  ;;  %3402 = vmatpush3.msra.mxu0 %v2192_v13 }
 0x1a9   : >> { %3467 = vmatpush3.msra.mxu1 %v2192_v13  ;;  %3403 = vmatprep.subr.mxu0 %v2191_v14 }
 0x1aa   : >> { %3452 = vmatprep.subr.mxu1 %v2191_v14  ;;  %3321 = vmatprep.mubr.f32.mxu0 %v4316_v27  ;;  %v2609_v27 = vld [vmem:[%s4158_s22 + $0xd8] sm:$0xff] }
 0x1ab   : >> { %3377 = vmatprep.mubr.f32.mxu1 %v4369_v19  ;;  %3404 = vmatpush3.msra.mxu0 %v2191_v14 }
 0x1ac   : >> { %3468 = vmatpush3.msra.mxu1 %v2191_v14  ;;  %3322 = vmatmul.mubr.f32.gmra.mxu0 %v4322_v33  ;;  %v2625_v33 = vld [vmem:[%s4158_s22 + $0xd9] sm:$0xff] }
 0x1ad   : >> { %3378 = vmatmul.mubr.f32.gmra.mxu1 %v4375_v25  ;;  %3405 = vmatprep.subr.mxu0 %v2190_v15 }
 0x1ae   : >> { %3453 = vmatprep.subr.mxu1 %v2190_v15  ;;  %3406 = vmatpush3.msra.mxu0 %v2190_v15 }
 0x1af   : >> { %3469 = vmatpush3.msra.mxu1 %v2190_v15  ;;  %3407 = vmatprep.subr.mxu0 %v2189_v16 }
 0x1b0   : >> { %3454 = vmatprep.subr.mxu1 %v2189_v16  ;;  %3324 = vmatprep.mubr.f32.mxu0 %v4332_v39  ;;  %v2610_v39 = vld [vmem:[%s4158_s22 + $0xe0] sm:$0xff] }
 0x1b1   : >> { %3380 = vmatprep.mubr.f32.mxu1 %v4385_v43  ;;  %3408 = vmatpush3.msra.mxu0 %v2189_v16 }
 0x1b2   : >> { %3470 = vmatpush3.msra.mxu1 %v2189_v16  ;;  %3325 = vmatmul.mubr.f32.gmra.mxu0 %v4338_v41  ;;  %v2626_v41 = vld [vmem:[%s4158_s22 + $0xe1] sm:$0xff] }
 0x1b3   : >> { %3381 = vmatmul.mubr.f32.gmra.mxu1 %v4391_v45  ;;  %3409 = vmatprep.subr.mxu0 %v2188_v21 }
 0x1b4   : >> { %3455 = vmatprep.subr.mxu1 %v2188_v21  ;;  %3410 = vmatpush3.msra.mxu0 %v2188_v21 }
 0x1b5   : >> { %3471 = vmatpush3.msra.mxu1 %v2188_v21  ;;  %3411 = vmatprep.subr.mxu0 %v2187_v22 }
 0x1b6   : >> { %3456 = vmatprep.subr.mxu1 %v2187_v22  ;;  %3327 = vmatprep.mubr.f32.mxu0 %v2607_v23 }
 0x1b7   : >> { %3383 = vmatprep.mubr.f32.mxu1 %v2623_v24  ;;  %3412 = vmatpush3.msra.mxu0 %v2187_v22 }
 0x1b8   : >> { %3472 = vmatpush3.msra.mxu1 %v2187_v22  ;;  %3328 = vmatmul.mubr.f32.gmra.mxu0 %v2608_v29 }
 0x1b9   : >> { %3384 = vmatmul.mubr.f32.gmra.mxu1 %v2624_v30  ;;  %3413 = vmatprep.subr.mxu0 %v2186_v31 }
 0x1ba   : >> { %3457 = vmatprep.subr.mxu1 %v2186_v31  ;;  %3414 = vmatpush3.msra.mxu0 %v2186_v31 }
 0x1bb   : >> { %3473 = vmatpush3.msra.mxu1 %v2186_v31  ;;  %3415 = vmatprep.subr.mxu0 %v2185_v32 }
 0x1bc   : >> { %3458 = vmatprep.subr.mxu1 %v2185_v32  ;;  %3330 = vmatprep.mubr.f32.mxu0 %v2609_v27 }
 0x1bd   : >> { %3386 = vmatprep.mubr.f32.mxu1 %v2625_v33  ;;  %3416 = vmatpush3.msra.mxu0 %v2185_v32 }
 0x1be   : >> { %3474 = vmatpush3.msra.mxu1 %v2185_v32  ;;  %3331 = vmatmul.mubr.f32.gmra.mxu0 %v2610_v39 }
 0x1bf   : >> { %3387 = vmatmul.mubr.f32.gmra.mxu1 %v2626_v41  ;;  %3417 = vmatprep.subr.mxu0 %v2184_v49 }
 0x1c0   : >> { %3459 = vmatprep.subr.mxu1 %v2184_v49  ;;  %3418 = vmatpush3.msra.mxu0 %v2184_v49 }
 0x1c1   : >> { %3475 = vmatpush3.msra.mxu1 %v2184_v49  ;;  %3419 = vmatprep.subr.mxu0 %v2183_v60 }
 0x1c2   : >> { %3460 = vmatprep.subr.mxu1 %v2183_v60  ;;  %3420 = vmatpush3.msra.mxu0 %v2183_v60 }
 0x1c3   : >> { %3476 = vmatpush3.msra.mxu1 %v2183_v60  ;;  %3421 = vmatprep.mubr.f32.mxu0 %v4293_v2  ;;  %v2640_v2 = vld [vmem:[%s4158_s22 + $0xd2] sm:$0xff] }
 0x1c4   : >> { %3433 = vmatprep.mubr.f32.mxu1 %v4372_v20  ;;  %3422 = vmatmul.mubr.f32.vlgmr.msra.gmra.mxu0 %v4296_v3  ;;  %v2975_v50 = vpop.f32.mrf.mxu0  ;;  %v2641_v3 = vld [vmem:[%s4158_s22 + $0xda] sm:$0xff] }
 0x1c5   : >> { %3434 = vmatmul.mubr.f32.vlgmr.msra.gmra.mxu1 %v4378_v34  ;;  %v3031_v62 = vpop.f32.mrf.mxu1  ;;  %3424 = vmatprep.mubr.f32.mxu0 %v4303_v12 }
 0x1c6   : >> { %3436 = vmatprep.mubr.f32.mxu1 %v4388_v44  ;;  %v923_v55 = vadd.f32 %v3031_v62, %v2975_v50  ;;  %v772_v57 = vpop.f32.mrf.mxu0 }
 0x1c7   : >> { %v917_v58 = vpop.f32.mrf.mxu1 }
 0x1c8   : >> { %v918_v59 = vadd.f32 %v917_v58, %v772_v57  ;;  %3425 = vmatmul.mubr.f32.gmra.mxu0 %v4306_v17 }
 0x1c9   : >> { %3437 = vmatmul.mubr.f32.gmra.mxu1 %v4394_v46  ;;  %3427 = vmatprep.mubr.f32.mxu0 %v4313_v26 }
 0x1ca   : >> { %3439 = vmatprep.mubr.f32.mxu1 %v2639_v56  ;;  %v2978_v61 = vpop.f32.mrf.mxu0 }
 0x1cb   : >> { %v3034_v63 = vpop.f32.mrf.mxu1 }
 0x1cc   : >> { %v933_v12 = vadd.f32 %v3034_v63, %v2978_v61  ;;  %3428 = vmatmul.mubr.f32.gmra.mxu0 %v4319_v28  ;;  %v782_v0 = vpop.f32.mrf.mxu0 }
 0x1cd   : >> { %3440 = vmatmul.mubr.f32.gmra.mxu1 %v2640_v2  ;;  %v927_v4 = vpop.f32.mrf.mxu1  ;;  %3430 = vmatprep.mubr.f32.mxu0 %v4329_v38 }
 0x1ce   : >> { %3442 = vmatprep.mubr.f32.mxu1 %v2641_v3  ;;  %v928_v17 = vadd.f32 %v927_v4, %v782_v0 }
 0x1d0   : >> { %3431 = vmatmul.mubr.f32.gmra.mxu0 %v4335_v40  ;;  %v2981_v26 = vpop.f32.mrf.mxu0 }
 0x1d1   : >> { %3443 = vmatmul.mubr.f32.gmra.mxu1 %v2642_v9  ;;  %v3037_v10 = vpop.f32.mrf.mxu1 }
 0x1d2   : >> { %v943_v11 = vadd.f32 %v3037_v10, %v2981_v26  ;;  %v792_v18 = vpop.f32.mrf.mxu0 }
 0x1d3   : >> { %v937_v19 = vpop.f32.mrf.mxu1 }
 0x1d4   : >> { %v938_v20 = vadd.f32 %v937_v19, %v792_v18 }
 0x1d6   : >> { %v2984_v25 = vpop.f32.mrf.mxu0 }
 0x1d7   : >> { %v3040_v34 = vpop.f32.mrf.mxu1 }
 0x1d8   : >> { %v953_v28 = vadd.f32 %v3040_v34, %v2984_v25  ;;  %v802_v35 = vpop.f32.mrf.mxu0 }
 0x1d9   : >> { %v947_v36 = vpop.f32.mrf.mxu1 }
 0x1da   : >> { %v948_v37 = vadd.f32 %v947_v36, %v802_v35 }
 0x1dc   : >> { %v2987_v42 = vpop.f32.mrf.mxu0 }
 0x1dd   : >> { %v3043_v38 = vpop.f32.mrf.mxu1 }
 0x1de   : >> { %v963_v43 = vadd.f32 %v3043_v38, %v2987_v42  ;;  %v812_v44 = vpop.f32.mrf.mxu0 }
 0x1df   : >> { %v957_v45 = vpop.f32.mrf.mxu1 }
 0x1e0   : >> { %v958_v46 = vadd.f32 %v957_v45, %v812_v44 }
 0x1e2   : >> { %v2990_v40 = vpop.f32.mrf.mxu0 }
 0x1e3   : >> { %v3046_v47 = vpop.f32.mrf.mxu1 }
 0x1e4   : >> { %v973_v48 = vadd.f32 %v3046_v47, %v2990_v40  ;;  %v822_v51 = vpop.f32.mrf.mxu0 }
 0x1e5   : >> { %v967_v52 = vpop.f32.mrf.mxu1 }
 0x1e6   : >> { %v968_v53 = vadd.f32 %v967_v52, %v822_v51 }
 0x1e8   : >> { %v2993_v54 = vpop.f32.mrf.mxu0 }
 0x1e9   : >> { %v3049_v6 = vpop.f32.mrf.mxu1 }
 0x1ea   : >> { %v983_v5 = vadd.f32 %v3049_v6, %v2993_v54  ;;  %v832_v7 = vpop.f32.mrf.mxu0 }
 0x1eb   : >> { %v977_v8 = vpop.f32.mrf.mxu1 }
 0x1ec   : >> { %v978_v13 = vadd.f32 %v977_v8, %v832_v7 }
 0x1ee   : >> { %v2996_v14 = vpop.f32.mrf.mxu0 }
 0x1ef   : >> { %v3052_v15 = vpop.f32.mrf.mxu1 }
 0x1f0   : >> { %v993_v16 = vadd.f32 %v3052_v15, %v2996_v14  ;;  %v842_v21 = vpop.f32.mrf.mxu0 }
 0x1f1   : >> { %v987_v22 = vpop.f32.mrf.mxu1 }
 0x1f2   : >> { %v4448_v23 = vadd.f32 %v987_v22, %v842_v21 }
 0x1f4   : >> { %v3087_v24 = vpop.f32.mrf.mxu0 }
 0x1f5   : >> { %v3143_v29 = vpop.f32.mrf.mxu1  ;;  %v1175_v30 = vadd.f32 %v3087_v24, %v923_v55 }
 0x1f6   : >> { %v1095_v31 = vpop.f32.mrf.mxu0 }
 0x1f7   : >> { %v1292_v32 = vpop.f32.mrf.mxu1  ;;  %v4450_v27 = vadd.f32 %v3143_v29, %v1175_v30  ;;  %v1174_v33 = vadd.f32 %v1095_v31, %v918_v59 }
 0x1f9   : >> { %v4452_v39 = vadd.f32 %v1292_v32, %v1174_v33 }
 0x1fa   : >> { %v3090_v41 = vpop.f32.mrf.mxu0 }
 0x1fb   : >> { %v3146_v49 = vpop.f32.mrf.mxu1  ;;  %v1177_v60 = vadd.f32 %v3090_v41, %v933_v12 }
 0x1fc   : >> { %v1105_v50 = vpop.f32.mrf.mxu0 }
 0x1fd   : >> { %v1302_v62 = vpop.f32.mrf.mxu1  ;;  %v4454_v56 = vadd.f32 %v3146_v49, %v1177_v60  ;;  %v1176_v57 = vadd.f32 %v1105_v50, %v928_v17 }
 0x1ff   : >> { %v4456_v58 = vadd.f32 %v1302_v62, %v1176_v57 }
 0x200   : >> { %v3093_v2 = vpop.f32.mrf.mxu0 }
 0x201   : >> { %v3149_v3 = vpop.f32.mrf.mxu1  ;;  %v1179_v55 = vadd.f32 %v3093_v2, %v943_v11 }
 0x202   : >> { %v1115_v61 = vpop.f32.mrf.mxu0 }
 0x203   : >> { %v1312_v63 = vpop.f32.mrf.mxu1  ;;  %v4458_v0 = vadd.f32 %v3149_v3, %v1179_v55  ;;  %v1178_v59 = vadd.f32 %v1115_v61, %v938_v20 }
 0x205   : >> { %v4460_v4 = vadd.f32 %v1312_v63, %v1178_v59 }
 0x206   : >> { %v3096_v9 = vpop.f32.mrf.mxu0 }
 0x207   : >> { %v3152_v26 = vpop.f32.mrf.mxu1  ;;  %v1181_v12 = vadd.f32 %v3096_v9, %v953_v28 }
 0x208   : >> { %v1125_v10 = vpop.f32.mrf.mxu0 }
 0x209   : >> { %v1322_v18 = vpop.f32.mrf.mxu1  ;;  %v4462_v19 = vadd.f32 %v3152_v26, %v1181_v12  ;;  %v1180_v17 = vadd.f32 %v1125_v10, %v948_v37 }
 0x20b   : >> { %v4464_v25 = vadd.f32 %v1322_v18, %v1180_v17 }
 0x20c   : >> { %v3099_v34 = vpop.f32.mrf.mxu0 }
 0x20d   : >> { %v3155_v35 = vpop.f32.mrf.mxu1  ;;  %v1183_v11 = vadd.f32 %v3099_v34, %v963_v43 }
 0x20e   : >> { %v1135_v36 = vpop.f32.mrf.mxu0 }
 0x20f   : >> { %v1332_v42 = vpop.f32.mrf.mxu1  ;;  %v4466_v38 = vadd.f32 %v3155_v35, %v1183_v11  ;;  %v1182_v20 = vadd.f32 %v1135_v36, %v958_v46 }
 0x211   : >> { %v4468_v44 = vadd.f32 %v1332_v42, %v1182_v20 }
 0x212   : >> { %v3102_v45 = vpop.f32.mrf.mxu0 }
 0x213   : >> { %v3158_v40 = vpop.f32.mrf.mxu1  ;;  %v1185_v28 = vadd.f32 %v3102_v45, %v973_v48 }
 0x214   : >> { %v1145_v47 = vpop.f32.mrf.mxu0 }
 0x215   : >> { %v1342_v51 = vpop.f32.mrf.mxu1  ;;  %v4470_v52 = vadd.f32 %v3158_v40, %v1185_v28  ;;  %v1184_v37 = vadd.f32 %v1145_v47, %v968_v53 }
 0x217   : >> { %v4472_v54 = vadd.f32 %v1342_v51, %v1184_v37 }
 0x218   : >> { %v3105_v6 = vpop.f32.mrf.mxu0 }
 0x219   : >> { %v3161_v7 = vpop.f32.mrf.mxu1  ;;  %v1187_v43 = vadd.f32 %v3105_v6, %v983_v5 }
 0x21a   : >> { %v1155_v8 = vpop.f32.mrf.mxu0 }
 0x21b   : >> { %v1352_v14 = vpop.f32.mrf.mxu1  ;;  %v4474_v15 = vadd.f32 %v3161_v7, %v1187_v43  ;;  %v1186_v46 = vadd.f32 %v1155_v8, %v978_v13 }
 0x21d   : >> { %v4476_v21 = vadd.f32 %v1352_v14, %v1186_v46 }
 0x21e   : >> { %v3108_v22 = vpop.f32.mrf.mxu0 }
 0x21f   : >> { %v3164_v24 = vpop.f32.mrf.mxu1  ;;  %v1189_v48 = vadd.f32 %v3108_v22, %v993_v16 }
 0x220   : >> { %v1165_v29 = vpop.f32.mrf.mxu0 }
 0x221   : >> { %v1362_v30 = vpop.f32.mrf.mxu1  ;;  %v4478_v31 = vadd.f32 %v3164_v24, %v1189_v48  ;;  %v1188_v53 = vadd.f32 %v1165_v29, %v4448_v23 }
 0x223   : >> { %v4481_v32 = vadd.f32 %v1362_v30, %v1188_v53 }
 0x224   : >> { %v3199_v33 = vpop.f32.mrf.mxu0 }
 0x225   : >> { %v4483_v5 = vpop.f32.mrf.mxu1 }
 0x226   : >> { %v1486_v41 = vpop.f32.mrf.mxu0 }
 0x227   : >> { %v4485_v49 = vpop.f32.mrf.mxu1 }
 0x22a   : >> { %v3202_v13 = vpop.f32.mrf.mxu0 }
 0x22b   : >> { %v4487_v60 = vpop.f32.mrf.mxu1 }
 0x22c   : >> { %v1496_v50 = vpop.f32.mrf.mxu0 }
 0x22d   : >> { %v4489_v62 = vpop.f32.mrf.mxu1 }
 0x230   : >> { %v3205_v16 = vpop.f32.mrf.mxu0 }
 0x231   : >> { %v4491_v57 = vpop.f32.mrf.mxu1 }
 0x232   : >> { %v1506_v2 = vpop.f32.mrf.mxu0 }
 0x233   : >> { %v4493_v3 = vpop.f32.mrf.mxu1 }
 0x236   : >> { %v3208_v23 = vpop.f32.mrf.mxu0 }
 0x237   : >> { %v4495_v55 = vpop.f32.mrf.mxu1 }
 0x238   : >> { %4699 = vst [vmem:[#allocation14_spill] sm:$0xff] %v4495_v55  ;;  %v1516_v61 = vpop.f32.mrf.mxu0 }
 0x239   : >> { %v4497_v63 = vpop.f32.mrf.mxu1 }
 0x23a   : >> { %4700 = vst [vmem:[#allocation15_spill] sm:$0xff] %v4497_v63  ;;  %v1570_v63 = vadd.f32 %v3205_v16, %v4458_v0 }
 0x23c   : >> { %v3211_v59 = vpop.f32.mrf.mxu0 }
 0x23d   : >> { %v3267_v9 = vpop.f32.mrf.mxu1 }
 0x23e   : >> { %v1526_v26 = vpop.f32.mrf.mxu0 }
 0x23f   : >> { %v1720_v12 = vpop.f32.mrf.mxu1  ;;  %v1573_v55 = vadd.f32 %v1526_v26, %v4468_v44 }
 0x242   : >> { %v3214_v10 = vpop.f32.mrf.mxu0 }
 0x243   : >> { %v4499_v18 = vpop.f32.mrf.mxu1 }
 0x244   : >> { %4701 = vst [vmem:[#allocation16_spill] sm:$0xff] %v4499_v18  ;;  %v1536_v17 = vpop.f32.mrf.mxu0  ;;  %v1567_v18 = vadd.f32 %v1496_v50, %v4456_v58  ;;  %v1576_v58 = vadd.f32 %v3214_v10, %v4470_v52 }
 0x245   : >> { %v4501_v34 = vpop.f32.mrf.mxu1  ;;  %v1575_v0 = vadd.f32 %v1536_v17, %v4472_v54 }
 0x246   : >> { %4702 = vst [vmem:[#allocation17_spill] sm:$0xff] %v4501_v34  ;;  %v1761_v50 = vadd.f32 %v4489_v62, %v1567_v18 }
 0x248   : >> { %v3217_v35 = vpop.f32.mrf.mxu0 }
 0x249   : >> { %v4503_v11 = vpop.f32.mrf.mxu1  ;;  %v1578_v44 = vadd.f32 %v3217_v35, %v4474_v15 }
 0x24a   : >> { %4703 = vst [vmem:[#allocation18_spill] sm:$0xff] %v4503_v11  ;;  %v1546_v36 = vpop.f32.mrf.mxu0 }
 0x24b   : >> { %v4505_v42 = vpop.f32.mrf.mxu1 }
 0x24c   : >> { %4704 = vst [vmem:[#allocation19_spill] sm:$0xff] %v4505_v42 }
 0x24e   : >> { %v3220_v20 = vpop.f32.mrf.mxu0 }
 0x24f   : >> { %v4507_v45 = vpop.f32.mrf.mxu1  ;;  %v1580_v52 = vadd.f32 %v3220_v20, %v4478_v31 }
 0x250   : >> { %4705 = vst [vmem:[#allocation20_spill] sm:$0xff] %v4507_v45  ;;  %v1556_v40 = vpop.f32.mrf.mxu0 }
 0x251   : >> { %v4509_v28 = vpop.f32.mrf.mxu1  ;;  %v1579_v54 = vadd.f32 %v1556_v40, %v4481_v32 }
 0x252   : >> { %4706 = vst [vmem:[#allocation21_spill] sm:$0xff] %v4509_v28 }
 0x253   : >> { %v4723_v26 = vld [vmem:[#allocation19_spill] sm:$0xff] }
 0x254   : >> { %v3311_v47 = vpop.f32.mrf.mxu0 }
 0x255   : >> { %v4511_v51 = vpop.f32.mrf.mxu1 }
 0x256   : >> { %4707 = vst [vmem:[#allocation22_spill] sm:$0xff] %v4511_v51  ;;  %v1877_v37 = vpop.f32.mrf.mxu0 }
 0x257   : >> { %v4513_v6 = vpop.f32.mrf.mxu1 }
 0x258   : >> { %4708 = vst [vmem:[#allocation23_spill] sm:$0xff] %v4513_v6 }
 0x259   : >> { %v4725_v20 = vld [vmem:[#allocation21_spill] sm:$0xff] }
 0x25a   : >> { %v3314_v7 = vpop.f32.mrf.mxu0  ;;  %v1773_v40 = vadd.f32 %v4725_v20, %v1579_v54 }
 0x25b   : >> { %v4515_v43 = vpop.f32.mrf.mxu1 }
 0x25c   : >> { %4709 = vst [vmem:[#allocation24_spill] sm:$0xff] %v4515_v43  ;;  %v1887_v8 = vpop.f32.mrf.mxu0 }
 0x25d   : >> { %v4517_v14 = vpop.f32.mrf.mxu1  ;;  %v1958_v18 = vadd.f32 %v1887_v8, %v1761_v50 }
 0x25e   : >> { %4710 = vst [vmem:[#allocation25_spill] sm:$0xff] %v4517_v14 }
 0x260   : >> { %v3317_v46 = vpop.f32.mrf.mxu0 }
 0x261   : >> { %v4519_v22 = vpop.f32.mrf.mxu1 }
 0x262   : >> { %4711 = vst [vmem:[#allocation26_spill] sm:$0xff] %v4519_v22  ;;  %v1897_v24 = vpop.f32.mrf.mxu0  ;;  %v1566_v22 = vadd.f32 %v3199_v33, %v4450_v27 }
 0x263   : >> { %v4521_v48 = vpop.f32.mrf.mxu1 }
 0x264   : >> { %4712 = vst [vmem:[#allocation27_spill] sm:$0xff] %v4521_v48  ;;  %v1565_v48 = vadd.f32 %v1486_v41, %v4452_v39  ;;  %v1760_v39 = vadd.f32 %v4483_v5, %v1566_v22  ;;  %v1764_v5 = vadd.f32 %v4491_v57, %v1570_v63 }
 0x266   : >> { %v3320_v29 = vpop.f32.mrf.mxu0  ;;  %v1759_v33 = vadd.f32 %v4485_v49, %v1565_v48  ;;  %v1961_v17 = vadd.f32 %v3317_v46, %v1764_v5 }
 0x267   : >> { %v4523_v30 = vpop.f32.mrf.mxu1 }
 0x268   : >> { %4713 = vst [vmem:[#allocation28_spill] sm:$0xff] %v4523_v30  ;;  %v4525_v53 = vpop.f32.mrf.mxu0  ;;  %v1956_v31 = vadd.f32 %v1877_v37, %v1759_v33  ;;  %v4727_v37 = vld [vmem:[#allocation23_spill] sm:$0xff] }
 0x269   : >> { %4714 = vst [vmem:[#allocation29_spill] sm:$0xff] %v4525_v53  ;;  %v4527_v1 = vpop.f32.mrf.mxu1  ;;  %v1568_v53 = vadd.f32 %v3202_v13, %v4454_v56  ;;  %v1572_v56 = vadd.f32 %v3208_v23, %v4462_v19  ;;  %v1577_v13 = vadd.f32 %v1546_v36, %v4476_v21  ;;  %v1767_v19 = vadd.f32 %v1720_v12, %v1573_v55  ;;  %v4719_v23 = vld [vmem:[#allocation15_spill] sm:$0xff]  ;;  %v4722_v55 = vld [vmem:[#allocation18_spill] sm:$0xff]  ;;  %v4724_v36 = vld [vmem:[#allocation20_spill] sm:$0xff] }
 0x26a   : >> { %4715 = vst [vmem:[#allocation30_spill] sm:$0xff] %v4527_v1  ;;  %v1574_v1 = vadd.f32 %v3211_v59, %v4466_v38  ;;  %v1571_v38 = vadd.f32 %v1516_v61, %v4464_v25  ;;  %v4720_v61 = vld [vmem:[#allocation16_spill] sm:$0xff]  ;;  %v4721_v59 = vld [vmem:[#allocation17_spill] sm:$0xff] }
 0x26b   : >> { %v1770_v62 = vadd.f32 %v4720_v61, %v1576_v58  ;;  %v1769_v57 = vadd.f32 %v4721_v59, %v1575_v0  ;;  %v1771_v12 = vadd.f32 %v4723_v26, %v1577_v13  ;;  %v4729_v0 = vld [vmem:[#allocation25_spill] sm:$0xff] }
 0x26c   : >> { %v3323_v6 = vpop.f32.mrf.mxu0  ;;  %v1768_v41 = vadd.f32 %v3267_v9, %v1574_v1  ;;  %v1765_v21 = vadd.f32 %v4719_v23, %v1571_v38  ;;  %v1772_v9 = vadd.f32 %v4722_v55, %v1578_v44 }
 0x26d   : >> { %v3379_v51 = vpop.f32.mrf.mxu1 }
 0x26e   : >> { %v1917_v28 = vpop.f32.mrf.mxu0  ;;  %v1965_v1 = vadd.f32 %v3323_v6, %v1768_v41  ;;  %v4730_v41 = vld [vmem:[#allocation26_spill] sm:$0xff] }
 0x26f   : >> { %v2111_v43 = vpop.f32.mrf.mxu1  ;;  %v1964_v10 = vadd.f32 %v1917_v28, %v1767_v19  ;;  %v2150_v28 = vadd.f32 %v4727_v37, %v1956_v31  ;;  %v2155_v44 = vadd.f32 %v4730_v41, %v1961_v17 }
 0x270   : >> { %v2159_v22 = vadd.f32 %v3379_v51, %v1965_v1  ;;  %v4731_v51 = vld [vmem:[#allocation27_spill] sm:$0xff] }
 0x272   : >> { %v3326_v45 = vpop.f32.mrf.mxu0 }
 0x273   : >> { %v4529_v42 = vpop.f32.mrf.mxu1 }
 0x274   : >> { %4716 = vst [vmem:[#allocation31_spill] sm:$0xff] %v4529_v42  ;;  %v1927_v14 = vpop.f32.mrf.mxu0  ;;  %v1569_v42 = vadd.f32 %v1506_v2, %v4460_v4  ;;  %v1762_v4 = vadd.f32 %v4487_v60, %v1568_v53  ;;  %v1957_v60 = vadd.f32 %v3311_v47, %v1760_v39  ;;  %v4718_v2 = vld [vmem:[#allocation14_spill] sm:$0xff]  ;;  %v1967_v53 = vadd.f32 %v3326_v45, %v1770_v62 }
 0x275   : >> { %v4531_v11 = vpop.f32.mrf.mxu1  ;;  %v1766_v15 = vadd.f32 %v4718_v2, %v1572_v56  ;;  %v4726_v47 = vld [vmem:[#allocation22_spill] sm:$0xff]  ;;  %v1966_v39 = vadd.f32 %v1927_v14, %v1769_v57 }
 0x276   : >> { %4717 = vst [vmem:[#allocation32_spill] sm:$0xff] %v4531_v11  ;;  %v1763_v49 = vadd.f32 %v4493_v3, %v1569_v42  ;;  %v1959_v32 = vadd.f32 %v3314_v7, %v1762_v4  ;;  %v1774_v42 = vadd.f32 %v4724_v36, %v1580_v52  ;;  %v2151_v6 = vadd.f32 %v4726_v47, %v1957_v60  ;;  %v4736_v36 = vld [vmem:[#allocation29_spill] sm:$0xff] }
 0x277   : >> { %v1963_v48 = vadd.f32 %v3320_v29, %v1766_v15  ;;  %v2158_v7 = vadd.f32 %v2111_v43, %v1964_v10  ;;  %v2152_v4 = vadd.f32 %v4729_v0, %v1958_v18  ;;  %v1962_v20 = vadd.f32 %v4736_v36, %v1765_v21 }
 0x278   : >> { %v3329_v34 = vpop.f32.mrf.mxu0  ;;  %v1960_v35 = vadd.f32 %v1897_v24, %v1763_v49  ;;  %v4728_v24 = vld [vmem:[#allocation24_spill] sm:$0xff] }
 0x279   : >> { %v4535_v30 = vpop.f32.mrf.mxu1  ;;  %v1969_v56 = vadd.f32 %v3329_v34, %v1772_v9  ;;  %v2153_v33 = vadd.f32 %v4728_v24, %v1959_v32  ;;  %v4732_v34 = vld [vmem:[#allocation13_spill] sm:$0xff]  ;;  %v4733_v49 = vld [vmem:[#allocation28_spill] sm:$0xff] }
 0x27a   : >> { %v4543_v11 = vpop.f32.mrf.mxu0  ;;  %v2154_v29 = vadd.f32 %v4731_v51, %v1960_v35  ;;  %v2157_v19 = vadd.f32 %v4733_v49, %v1963_v48 }
 0x27b   : >> { %v4545_v27 = vpop.f32.mrf.mxu1  ;;  %v4734_v52 = vld [vmem:[#allocation31_spill] sm:$0xff]  ;;  %v2163_v2 = vadd.f32 %v4535_v30, %v1969_v56  ;;  %v1968_v55 = vadd.f32 %v4543_v11, %v1771_v12 }
 0x27c   : >> { %v2161_v54 = vadd.f32 %v4734_v52, %v1967_v53 }
 0x27d   : >> { %v4735_v60 = vld [vmem:[#allocation32_spill] sm:$0xff] }
 0x27e   : >> { %v3332_v16 = vpop.f32.mrf.mxu0  ;;  %v2160_v1 = vadd.f32 %v4735_v60, %v1966_v39  ;;  %v2162_v39 = vadd.f32 %v4545_v27, %v1968_v55 }
 0x27f   : >> { %v4559_v25 = vpop.f32.mrf.mxu1  ;;  %v1971_v9 = vadd.f32 %v3332_v16, %v1774_v42 }
 0x280   : >> { %v1947_v63 = vpop.f32.mrf.mxu0 }
 0x281   : >> { %v4567_v3 = vpop.f32.mrf.mxu1  ;;  %v1970_v47 = vadd.f32 %v1947_v63, %v1773_v40  ;;  %v2165_v21 = vadd.f32 %v4559_v25, %v1971_v9 }
 0x283   : >> { %v2164_v24 = vadd.f32 %v4567_v3, %v1970_v47 }
 0x284   : >> { %v3423_v38 = vpop.f32.mrf.mxu0 }
 0x285   : >> { %v3435_v58 = vpop.f32.mrf.mxu1  ;;  %v2345_v8 = vadd.f32 %v3423_v38, %v2151_v6 }
 0x286   : >> { %v2353_v46 = vadd.f32 %v3435_v58, %v2159_v22  ;;  %v2265_v45 = vpop.f32.mrf.mxu0 }
 0x287   : >> { %v2305_v14 = vpop.f32.mrf.mxu1  ;;  %v2367_v13 = vadd.f32 %v4732_v34, %v2345_v8  ;;  %v2344_v5 = vadd.f32 %v2265_v45, %v2150_v28  ;;  %v4737_v8 = vld [vmem:[#allocation30_spill] sm:$0xff] }
 0x288   : >> { %v2375_v50 = vadd.f32 %v4732_v34, %v2353_v46  ;;  %v2352_v43 = vadd.f32 %v2305_v14, %v2158_v7  ;;  %v3426_v15 = vpop.f32.mrf.mxu0  ;;  %v2156_v46 = vadd.f32 %v4737_v8, %v1962_v20 }
 0x289   : >> { %v3438_v23 = vpop.f32.mrf.mxu1  ;;  %v2383_v61 = vmax.f32 %v2367_v13, 0.0  ;;  %v2366_v59 = vadd.f32 %v4732_v34, %v2344_v5  ;;  %v2347_v26 = vadd.f32 %v3426_v15, %v2153_v33 }
 0x28a   : >> { %v2391_v62 = vmax.f32 %v2375_v50, 0.0  ;;  %v2374_v57 = vadd.f32 %v4732_v34, %v2352_v43  ;;  %v2355_v31 = vadd.f32 %v3438_v23, %v2161_v54  ;;  %v2275_v30 = vpop.f32.mrf.mxu0 }
 0x28b   : >> { %v2315_v10 = vpop.f32.mrf.mxu1  ;;  %2401 = vst [vmem:[%s4587_s4 + $0x8] sm:$0xff] %v2383_v61  ;;  %v2382_v32 = vmax.f32 %v2366_v59, 0.0  ;;  %v2346_v17 = vadd.f32 %v2275_v30, %v2152_v4  ;;  %v2369_v6 = vadd.f32 %v4732_v34, %v2347_v26 }
 0x28c   : >> { %2409 = vst [vmem:[%s4587_s4 + $0x48] sm:$0xff] %v2391_v62  ;;  %v2390_v18 = vmax.f32 %v2374_v57, 0.0  ;;  %v2354_v35 = vadd.f32 %v2315_v10, %v2160_v1  ;;  %v2377_v11 = vadd.f32 %v4732_v34, %v2355_v31  ;;  %v3429_v16 = vpop.f32.mrf.mxu0 }
 0x28d   : >> { %v3441_v12 = vpop.f32.mrf.mxu1  ;;  %2400 = vst [vmem:[%s4587_s4] sm:$0xff] %v2382_v32  ;;  %v2368_v42 = vadd.f32 %v4732_v34, %v2346_v17  ;;  %v2349_v48 = vadd.f32 %v3429_v16, %v2155_v44  ;;  %v2385_v63 = vmax.f32 %v2369_v6, 0.0 }
 0x28e   : >> { %2408 = vst [vmem:[%s4587_s4 + $0x40] sm:$0xff] %v2390_v18  ;;  %v2376_v22 = vadd.f32 %v4732_v34, %v2354_v35  ;;  %v2357_v53 = vadd.f32 %v3441_v12, %v2163_v2  ;;  %v2393_v40 = vmax.f32 %v2377_v11, 0.0  ;;  %v2285_v56 = vpop.f32.mrf.mxu0 }
 0x28f   : >> { %v2325_v38 = vpop.f32.mrf.mxu1  ;;  %v2384_v58 = vmax.f32 %v2368_v42, 0.0  ;;  %v2371_v28 = vadd.f32 %v4732_v34, %v2349_v48  ;;  %2403 = vst [vmem:[%s4587_s4 + $0x18] sm:$0xff] %v2385_v63  ;;  %v2348_v27 = vadd.f32 %v2285_v56, %v2154_v29 }
 0x290   : >> { %v2392_v37 = vmax.f32 %v2376_v22, 0.0  ;;  %v2379_v7 = vadd.f32 %v4732_v34, %v2357_v53  ;;  %2411 = vst [vmem:[%s4587_s4 + $0x58] sm:$0xff] %v2393_v40  ;;  %v2356_v25 = vadd.f32 %v2325_v38, %v2162_v39  ;;  %v3432_v33 = vpop.f32.mrf.mxu0 }
 0x291   : >> { %v3444_v0 = vpop.f32.mrf.mxu1  ;;  %2402 = vst [vmem:[%s4587_s4 + $0x10] sm:$0xff] %v2384_v58  ;;  %v2387_v4 = vmax.f32 %v2371_v28, 0.0  ;;  %v2351_v44 = vadd.f32 %v3432_v33, %v2157_v19  ;;  %v2370_v45 = vadd.f32 %v4732_v34, %v2348_v27 }
 0x292   : >> { %2410 = vst [vmem:[%s4587_s4 + $0x50] sm:$0xff] %v2392_v37  ;;  %v2395_v41 = vmax.f32 %v2379_v7, 0.0  ;;  %v2359_v51 = vadd.f32 %v3444_v0, %v2165_v21  ;;  %v2378_v14 = vadd.f32 %v4732_v34, %v2356_v25  ;;  %v2295_v3 = vpop.f32.mrf.mxu0 }
 0x293   : >> { %v2335_v13 = vpop.f32.mrf.mxu1  ;;  %2405 = vst [vmem:[%s4587_s4 + $0x28] sm:$0xff] %v2387_v4  ;;  %v2373_v29 = vadd.f32 %v4732_v34, %v2351_v44  ;;  %v2350_v5 = vadd.f32 %v2295_v3, %v2156_v46  ;;  %v2386_v49 = vmax.f32 %v2370_v45, 0.0 }
 0x294   : >> { %2413 = vst [vmem:[%s4587_s4 + $0x68] sm:$0xff] %v2395_v41  ;;  %v2381_v50 = vadd.f32 %v4732_v34, %v2359_v51  ;;  %v2358_v43 = vadd.f32 %v2335_v13, %v2164_v24  ;;  %v2394_v19 = vmax.f32 %v2378_v14, 0.0 }
 0x295   : >> { %v2389_v52 = vmax.f32 %v2373_v29, 0.0  ;;  %v2372_v60 = vadd.f32 %v4732_v34, %v2350_v5  ;;  %2404 = vst [vmem:[%s4587_s4 + $0x20] sm:$0xff] %v2386_v49 }
 0x296   : >> { %v2397_v54 = vmax.f32 %v2381_v50, 0.0  ;;  %v2380_v1 = vadd.f32 %v4732_v34, %v2358_v43  ;;  %2412 = vst [vmem:[%s4587_s4 + $0x60] sm:$0xff] %v2394_v19  ;;  %636 = sbr.rel (!%p634_p3) target bundleno = 226 (0xe2), region = 101 }
 0x297   : >> { %2407 = vst [vmem:[%s4587_s4 + $0x38] sm:$0xff] %v2389_v52  ;;  %v2388_v2 = vmax.f32 %v2372_v60, 0.0 }
 0x298   : >> { %2415 = vst [vmem:[%s4587_s4 + $0x78] sm:$0xff] %v2397_v54  ;;  %v2396_v15 = vmax.f32 %v2380_v1, 0.0 }
 0x299   : >> { %2406 = vst [vmem:[%s4587_s4 + $0x30] sm:$0xff] %v2388_v2 }
 0x29a   : >> { %2414 = vst [vmem:[%s4587_s4 + $0x70] sm:$0xff] %v2396_v15 }
 0x29b   : > { %3614 = shalt.err (!%p3611_p5)
}
 0x29c   : > { %s3615_s18 = scalar_lea.hbm %s4632_s10, 16384  ;;  %s3619_s29 = scalar_lea.hbm %s4681_s3, 32768 }
 0x29d   : > { %p3616_p2 = scmp.ne.s32.totalorder %s4632_s10, %s3615_s18  ;;  %p3620_p6 = scmp.lt.s32.totalorder %s4632_s10, %s4681_s3 }
 0x29e   : > { %p3621_p8 = scmp.lt.s32.totalorder %s3619_s29, %s3615_s18 }
 0x29f   : > { %p3617_p1 = pnand %p3616_p2, %p4738_p7 }
 0x2a0   : > { %p3622_p3 = por %p3621_p8, %p3620_p6 }
 0x2a1   : > { %p3618_p4 = pneg %p3617_p1 }
 0x2a3   : > { %p3623_p11 = pnand %p3622_p3, %p3618_p4 }
 0x2a5   : > { %3626 = shalt.err (!%p3623_p11)
}
 0x2a6   : > { %s3685_s25 = smov 128   ;;  %s3686_s4 = smov 8  }
 0x2a7   : > { %3483 = dma.vmem_to_hbm [thread:$0]  (%p4738_p7), %s4635_s11, 16384, %s4632_s10, %s2417_s21, %s3685_s25, %s3685_s25, %s3686_s4  }
 0x2a8 PF: > { %s2445_s8 = sand.u32 1, %s3661_s12   ;;  %p4739_p9 = scmp.ne.s32.totalorder %s4688_s19, 0 }
 0x2a9   : > { %p4740_p10 = scmp.ge.s32.totalorder %s3673_s15, 2  ;;  %s2446_s9 = scalar_lea.sflag [#allocation6], %s2445_s8 }
 0x2ab   : > { %p3494_p12 = pnand %p4740_p10, %p4739_p9 }
 0x2ad   : > { %p3495_p13 = pneg %p3494_p12 }
 0x2af   : > { %3656 = dma.done.wait (%p3495_p13), %s2446_s9, 16384  }
 0x2b0   : > { %3658 = vsyncadd (%p3495_p13), %s2446_s9, 4294950912  ;;  %p17_p0 = scmp.ge.s32.totalorder %s3761_s24, 4   ;;  %s4741_s12 = smov %s3665_s13 }
 0x2b1   : > { %s4742_s13 = smov %s3669_s14  ;;  %s4743_s14 = smov %s3781_s5 }
 0x2b2   : > { %s4744_s15 = smov %s3761_s24  ;;  %19 = sbr.rel (!%p17_p0) target bundleno = 6 (0x6), region = 112 }
 0x2b7   :  { %2451 = vsyncpa [#allocation5], 1 }
 0x2b8   :  { %2453 = vsyncpa [#allocation5 + $0x1], 1 }
 0x2b9   :  { %2454 = vsyncpa [#allocation8], 1 }
 0x2ba   :  { %2455 = vsyncpa [#allocation6], 1 }
 0x2bb   :  { %2457 = vsyncpa [#allocation6 + $0x1], 1 }

</bundles_post_ra>
